<compile_context>
chip_gen: v7x
topology: tpu7x:2x2x1
jax: 0.10.0
libtpu: 0.0.40
codegen_flags: <defaults>
</compile_context>

<pallas_src>
import functools

import jax
import jax.numpy as jnp
import numpy as np
from jax import lax
from jax.experimental import pallas as pl
from jax.experimental.pallas import tpu as pltpu

LANE = 128
SUBLANE = 8
MXU_DTYPE = jnp.bfloat16


def _round_up(x, m):
    return (x + m - 1) // m * m


# ------------------------------- Pallas kernels -------------------------------


def gru_conv_kernel(x_ref, h0_ref, wih_ref, whh_ref, bih_ref, bhh_ref,
                    wcv_ref, bcv_ref,
                    z_ref, hT_ref, s1_ref, s2_ref,
                    gi_scr, y_scr, h_scr,
                    *, batch_total):
    """Fused GRU (PyTorch gate order r,z,n) + 1x1-conv epilogue + BN partial sums.

    One batch-block of Bb rows per grid step.
      x_ref:   (T, Bb, Din_p)   bf16   time-major input (zero padded)
      h0_ref:  (Bb, Dh_p)       f32
      wih_ref: (Din_p, 3*Dh_p)  bf16   gates at 128-aligned column offsets
      whh_ref: (Dh_p, 3*Dh_p)   bf16
      bih/bhh: (1, 3*Dh_p)      f32
      wcv_ref: (Dh_p, CF_p)     bf16   Kronecker conv weight (w_conv^T (x) I_F)
      bcv_ref: (1, CF_p)        f32    conv bias expanded per lane
      z_ref:   (T, Bb, CF_p)    f32    pre-BN conv output (lane-dense)
      hT_ref:  (Bb, Dh_p)       f32    final hidden state
      s1/s2:   (1, 8, CF_p)     f32    masked per-block column sums of z and z**2
    """
    T, Bb, Din_p = x_ref.shape
    Dh_p = h0_ref.shape[-1]
    CF_p = wcv_ref.shape[-1]

    # ---- phase 1: hoisted input projection: one big MXU matmul over all timesteps ----
    x2 = x_ref[...].reshape(T * Bb, Din_p)                       # free reshape (Bb % 8 == 0)
    gi_scr[...] = (jnp.dot(x2, wih_ref[...],
                           preferred_element_type=jnp.float32) + bih_ref[...])

    # ---- phase 2: serial recurrence; only the h-matmul + gate math stay inside ----
    h_scr[...] = h0_ref[...]
    whh = whh_ref[...]                                           # hoisted weight/bias loads
    bhh = bhh_ref[...]

    # Time loop fully unrolled (T is small & static) so the scheduler can overlap the
    # y-store of step t-1 / gi-load of step t+1 with the serial h-matmul.
    # TODO(synk): for long T switch to lax.fori_loop(..., unroll=k) to bound code size.
    for t in range(T):
        h = h_scr[...]
        gi = gi_scr[t * Bb:(t + 1) * Bb, :]                      # sublane-aligned static slice
        gh = jnp.dot(h.astype(whh.dtype), whh,
                     preferred_element_type=jnp.float32) + bhh
        r = jax.nn.sigmoid(gi[:, 0:Dh_p] + gh[:, 0:Dh_p])        # 128-aligned gate slices
        zg = jax.nn.sigmoid(gi[:, Dh_p:2 * Dh_p] + gh[:, Dh_p:2 * Dh_p])
        n = jnp.tanh(gi[:, 2 * Dh_p:3 * Dh_p] + r * gh[:, 2 * Dh_p:3 * Dh_p])
        h_new = (1.0 - zg) * n + zg * h
        h_scr[...] = h_new
        y_scr[t * Bb:(t + 1) * Bb, :] = h_new                    # lane-dense store

    hT_ref[...] = h_scr[...]

    # ---- phase 3: fused 1x1 conv epilogue (lane-dense Kronecker matmul, no transpose) ----
    zc = jnp.dot(y_scr[...].astype(wcv_ref.dtype), wcv_ref[...],
                 preferred_element_type=jnp.float32) + bcv_ref[...]   # (T*Bb, CF_p)
    z_ref[...] = zc.reshape(T, Bb, CF_p)

    # ---- phase 4: BN partial sums; mask out padded batch rows ----
    row = lax.broadcasted_iota(jnp.int32, (T * Bb, CF_p), 0)
    b_global = pl.program_id(0) * Bb + (row % Bb)                # rows ordered (t, b_local)
    mask = (b_global < batch_total).astype(jnp.float32)
    zm = zc * mask
    s1 = jnp.sum(zm, axis=0, keepdims=True)                      # (1, CF_p)
    s2 = jnp.sum(zm * zc, axis=0, keepdims=True)
    s1_ref[...] = jnp.broadcast_to(s1, s1_ref.shape)
    s2_ref[...] = jnp.broadcast_to(s2, s2_ref.shape)


def bn_relu_kernel(z_ref, scale_ref, shift_ref, o_ref):
    """Apply the folded BatchNorm affine (per-lane scale/shift) + ReLU, lane-dense."""
    o_ref[...] = jnp.maximum(z_ref[...] * scale_ref[...] + shift_ref[...], 0.0)


# --------------------------------- parameters ---------------------------------


def init_params(key, in_channels, hidden_size, out_channels, state_size):
    Din = in_channels * state_size
    Dh = hidden_size * state_size
    ks = jax.random.split(key, 6)
    s = 1.0 / np.sqrt(Dh)
    sc = 1.0 / np.sqrt(hidden_size)          # 1x1 conv fan-in = hidden_size
    return dict(
        w_ih=jax.random.uniform(ks[0], (3 * Dh, Din), jnp.float32, -s, s),
        w_hh=jax.random.uniform(ks[1], (3 * Dh, Dh), jnp.float32, -s, s),
        b_ih=jax.random.uniform(ks[2], (3 * Dh,), jnp.float32, -s, s),
        b_hh=jax.random.uniform(ks[3], (3 * Dh,), jnp.float32, -s, s),
        w_conv=jax.random.uniform(ks[4], (out_channels, hidden_size), jnp.float32, -sc, sc),
        b_conv=jax.random.uniform(ks[5], (out_channels,), jnp.float32, -sc, sc),
        gamma=jnp.ones((out_channels,), jnp.float32),
        beta=jnp.zeros((out_channels,), jnp.float32),
    )


def _pad_gate_weights(w_t, rows_p, Dh, Dh_p, dtype):
    """(rows, 3*Dh) transposed weights -> (rows_p, 3*Dh_p), gates at 128-aligned columns."""
    rows = w_t.shape[0]
    out = jnp.zeros((rows_p, 3 * Dh_p), dtype)
    for g in range(3):
        out = out.at[:rows, g * Dh_p:g * Dh_p + Dh].set(
            w_t[:, g * Dh:(g + 1) * Dh].astype(dtype))
    return out


def _pad_gate_bias(b, Dh, Dh_p):
    out = jnp.zeros((1, 3 * Dh_p), jnp.float32)
    for g in range(3):
        out = out.at[0, g * Dh_p:g * Dh_p + Dh].set(b[g * Dh:(g + 1) * Dh])
    return out


# ---------------------------------- forward -----------------------------------


@functools.partial(jax.jit, static_argnums=(3, 4))
def tf_gru_block_forward(params, x, rnn_state, hidden_size, state_size):
    """x: (B, C, T, F) NCHW.  rnn_state: (1, B, hidden_size*state_size)."""
    B, C, T, Fdim = x.shape
    assert C == hidden_size, "y_.reshape(B,T,C,F) in the module requires hidden_size == in_channels"
    assert Fdim == state_size
    Din = C * Fdim
    Dh = hidden_size * state_size
    Cout = params["w_conv"].shape[0]
    CF = Cout * Fdim

    Din_p = _round_up(Din, LANE)
    Dh_p = _round_up(Dh, LANE)
    CF_p = _round_up(CF, LANE)
    Bb = SUBLANE
    nb = (B + Bb - 1) // Bb
    Bpad = nb * Bb

    # ---- parameter prep: pad + lane-align gates, bf16 MXU operands ----
    wih_p = _pad_gate_weights(params["w_ih"].T, Din_p, Dh, Dh_p, MXU_DTYPE)
    whh_p = _pad_gate_weights(params["w_hh"].T, Dh_p, Dh, Dh_p, MXU_DTYPE)
    bih_p = _pad_gate_bias(params["b_ih"], Dh, Dh_p)
    bhh_p = _pad_gate_bias(params["b_hh"], Dh, Dh_p)

    # Kronecker 1x1-conv weight: out[.., o*F+f] = sum_c y[.., c*F+f] * w_conv[o, c]
    eyeF = jnp.eye(Fdim, dtype=jnp.float32)
    wbig = jnp.einsum("oc,fg->cfog", params["w_conv"], eyeF).reshape(Dh, CF)
    wbig_p = jnp.zeros((Dh_p, CF_p), MXU_DTYPE).at[:Dh, :CF].set(wbig.astype(MXU_DTYPE))
    bcv_p = jnp.zeros((1, CF_p), jnp.float32).at[0, :CF].set(jnp.repeat(params["b_conv"], Fdim))

    # ---- input prep: NCHW -> time-major (T, Bpad, Din_p), zero padded, bf16 ----
    x_tbd = jnp.transpose(x, (2, 0, 1, 3)).reshape(T, B, Din)
    x_pad = jnp.zeros((T, Bpad, Din_p), MXU_DTYPE).at[:, :B, :Din].set(x_tbd.astype(MXU_DTYPE))
    h0_pad = jnp.zeros((Bpad, Dh_p), jnp.float32).at[:B, :Dh].set(rnn_state[0])

    # ---- kernel 1: fused GRU + 1x1 conv + BN partial sums (grid over batch blocks) ----
    kernel1 = functools.partial(gru_conv_kernel, batch_total=B)
    z_out, hT_out, s1_out, s2_out = pl.pallas_call(
        kernel1,
        grid=(nb,),
        in_specs=[
            pl.BlockSpec((T, Bb, Din_p), lambda i: (0, i, 0)),        # x
            pl.BlockSpec((Bb, Dh_p), lambda i: (i, 0)),               # h0
            pl.BlockSpec((Din_p, 3 * Dh_p), lambda i: (0, 0)),        # W_ih
            pl.BlockSpec((Dh_p, 3 * Dh_p), lambda i: (0, 0)),         # W_hh
            pl.BlockSpec((1, 3 * Dh_p), lambda i: (0, 0)),            # b_ih
            pl.BlockSpec((1, 3 * Dh_p), lambda i: (0, 0)),            # b_hh
            pl.BlockSpec((Dh_p, CF_p), lambda i: (0, 0)),             # W_big (conv)
            pl.BlockSpec((1, CF_p), lambda i: (0, 0)),                # conv bias
        ],
        out_specs=(
            pl.BlockSpec((T, Bb, CF_p), lambda i: (0, i, 0)),         # z (pre-BN)
            pl.BlockSpec((Bb, Dh_p), lambda i: (i, 0)),               # h_T
            pl.BlockSpec((1, 8, CF_p), lambda i: (i, 0, 0)),          # sum(z)
            pl.BlockSpec((1, 8, CF_p), lambda i: (i, 0, 0)),          # sum(z^2)
        ),
        out_shape=(
            jax.ShapeDtypeStruct((T, Bpad, CF_p), jnp.float32),
            jax.ShapeDtypeStruct((Bpad, Dh_p), jnp.float32),
            jax.ShapeDtypeStruct((nb, 8, CF_p), jnp.float32),
            jax.ShapeDtypeStruct((nb, 8, CF_p), jnp.float32),
        ),
        scratch_shapes=[
            pltpu.VMEM((T * Bb, 3 * Dh_p), jnp.float32),   # gi for all timesteps
            pltpu.VMEM((T * Bb, Dh_p), jnp.float32),       # hidden at every step
            pltpu.VMEM((Bb, Dh_p), jnp.float32),           # recurrent carry
        ],
        compiler_params=pltpu.CompilerParams(
            dimension_semantics=("parallel",),
            vmem_limit_bytes=32 * 1024 * 1024),
    )(x_pad, h0_pad, wih_p, whh_p, bih_p, bhh_p, wbig_p, bcv_p)

    # ---- tiny BN finalize in XLA: global stats -> folded per-lane scale/shift ----
    cnt = float(B * T * Fdim)
    s1_c = s1_out[:, 0, :CF].sum(axis=0).reshape(Cout, Fdim).sum(axis=1)
    s2_c = s2_out[:, 0, :CF].sum(axis=0).reshape(Cout, Fdim).sum(axis=1)
    mean_c = s1_c / cnt
    var_c = jnp.maximum(s2_c / cnt - mean_c * mean_c, 0.0)        # biased (train-mode) variance
    inv_std_c = lax.rsqrt(var_c + 1e-5)
    scale_c = params["gamma"] * inv_std_c
    shift_c = params["beta"] - mean_c * scale_c
    scale_l = jnp.zeros((1, CF_p), jnp.float32).at[0, :CF].set(jnp.repeat(scale_c, Fdim))
    shift_l = jnp.zeros((1, CF_p), jnp.float32).at[0, :CF].set(jnp.repeat(shift_c, Fdim))

    # ---- kernel 2: BN affine + ReLU, row-tiled, lane-dense output ----
    Ntot = T * Bpad
    TR = min(512, Ntot)                                           # multiple of 8 by construction
    out_flat = pl.pallas_call(
        bn_relu_kernel,
        grid=(pl.cdiv(Ntot, TR),),
        in_specs=[
            pl.BlockSpec((TR, CF_p), lambda i: (i, 0)),
            pl.BlockSpec((1, CF_p), lambda i: (0, 0)),
            pl.BlockSpec((1, CF_p), lambda i: (0, 0)),
        ],
        out_specs=pl.BlockSpec((TR, CF_p), lambda i: (i, 0)),
        out_shape=jax.ShapeDtypeStruct((Ntot, CF_p), jnp.float32),
        compiler_params=pltpu.CompilerParams(
            dimension_semantics=("parallel",),
            vmem_limit_bytes=32 * 1024 * 1024),
    )(z_out.reshape(Ntot, CF_p), scale_l, shift_l)

    # ---- un-pad and present NCHW output ----
    out = (out_flat.reshape(T, Bpad, CF_p)[:, :B, :CF]
           .reshape(T, B, Cout, Fdim)
           .transpose(1, 2, 0, 3))                                # (B, Cout, T, F)
    new_state = hT_out[:B, :Dh][None]                             # (1, B, Dh)
    return out, new_state


# ------------------------- pure-JAX reference (check) --------------------------


def reference_forward(params, x, rnn_state, hidden_size, state_size):
    """Reference; matmul operands cast to bf16 (f32 accumulate) to mirror the kernel's MXU path."""
    B, C, T, Fdim = x.shape
    Dh = hidden_size * state_size
    mx = MXU_DTYPE
    x_ = jnp.transpose(x, (0, 2, 1, 3)).reshape(B, T, C * Fdim)
    wih_t = params["w_ih"].T.astype(mx)
    whh_t = params["w_hh"].T.astype(mx)
    b_ih, b_hh = params["b_ih"], params["b_hh"]

    def step(h, x_t):
        gi = jnp.dot(x_t.astype(mx), wih_t, preferred_element_type=jnp.float32) + b_ih
        gh = jnp.dot(h.astype(mx), whh_t, preferred_element_type=jnp.float32) + b_hh
        r = jax.nn.sigmoid(gi[:, :Dh] + gh[:, :Dh])
        z = jax.nn.sigmoid(gi[:, Dh:2 * Dh] + gh[:, Dh:2 * Dh])
        n = jnp.tanh(gi[:, 2 * Dh:] + r * gh[:, 2 * Dh:])
        h_new = (1.0 - z) * n + z * h
        return h_new, h_new

    hT, ys = lax.scan(step, rnn_state[0], jnp.transpose(x_, (1, 0, 2)))
    y_ = jnp.transpose(ys, (1, 0, 2))                              # (B, T, Dh)
    y2 = y_.reshape(B, T, hidden_size, Fdim).transpose(0, 2, 1, 3)  # (B, H, T, F)
    z = jnp.einsum("bhtf,oh->botf", y2.astype(mx), params["w_conv"].astype(mx),
                   preferred_element_type=jnp.float32) + params["b_conv"][None, :, None, None]
    mean = z.mean(axis=(0, 2, 3), keepdims=True)
    var = ((z - mean) ** 2).mean(axis=(0, 2, 3), keepdims=True)
    zn = (z - mean) * lax.rsqrt(var + 1e-5)
    out = params["gamma"][None, :, None, None] * zn + params["beta"][None, :, None, None]
    return jnp.maximum(out, 0.0), hT[None]


# ------------------------------------ main -------------------------------------


if __name__ == "__main__":
    in_channels = 4
    hidden_size = 4       # the module's y_.reshape(B,T,C,F) requires hidden_size == in_channels
    out_channels = 4
    state_size = 7
    B, T = 2, 8

    key = jax.random.PRNGKey(0)
    k_param, k_x, k_h = jax.random.split(key, 3)
    params = init_params(k_param, in_channels, hidden_size, out_channels, state_size)

    x = jax.random.normal(k_x, (B, in_channels, T, state_size), jnp.float32)
    rnn_state = jax.random.normal(k_h, (1, B, hidden_size * state_size), jnp.float32)

    out, new_state = tf_gru_block_forward(params, x, rnn_state, hidden_size, state_size)
    jax.block_until_ready((out, new_state))

    out_ref, state_ref = reference_forward(params, x, rnn_state, hidden_size, state_size)
    # bf16 MXU operands dominate the tolerance.
    np.testing.assert_allclose(np.asarray(out), np.asarray(out_ref), atol=2e-2, rtol=2e-2)
    np.testing.assert_allclose(np.asarray(new_state), np.asarray(state_ref), atol=1e-2, rtol=1e-2)

    print("KERNEL_OK")
</pallas_src>

<mosaic_0001>
module attributes {stable_mosaic.version = 11 : i64} {
  func.func @gru_conv_kernel(%arg0: i32, %arg1: memref<8x8x128xbf16, #tpu.memory_space<vmem>>, %arg2: memref<8x128xf32, #tpu.memory_space<vmem>>, %arg3: memref<128x384xbf16, #tpu.memory_space<vmem>>, %arg4: memref<128x384xbf16, #tpu.memory_space<vmem>>, %arg5: memref<1x384xf32, #tpu.memory_space<vmem>>, %arg6: memref<1x384xf32, #tpu.memory_space<vmem>>, %arg7: memref<128x128xbf16, #tpu.memory_space<vmem>>, %arg8: memref<1x128xf32, #tpu.memory_space<vmem>>, %arg9: memref<8x8x128xf32, #tpu.memory_space<vmem>>, %arg10: memref<8x128xf32, #tpu.memory_space<vmem>>, %arg11: memref<1x8x128xf32, #tpu.memory_space<vmem>>, %arg12: memref<1x8x128xf32, #tpu.memory_space<vmem>>, %arg13: memref<64x384xf32, #tpu.memory_space<vmem>>, %arg14: memref<64x128xf32, #tpu.memory_space<vmem>>, %arg15: memref<8x128xf32, #tpu.memory_space<vmem>>) attributes {dimension_semantics = [#tpu.dimension_semantics<parallel>], iteration_bounds = array<i64: 1>, scalar_prefetch = 0 : i64, scratch_operands = 3 : i64, tpu.core_type = #tpu.core_type<tc>, window_params = [{transform_indices = @transform_0, window_bounds = array<i64: 8, 8, 128>}, {transform_indices = @transform_1, window_bounds = array<i64: 8, 128>}, {pipeline_mode = #tpu.pipeline_mode<synchronous>, transform_indices = @transform_2, window_bounds = array<i64: 128, 384>}, {pipeline_mode = #tpu.pipeline_mode<synchronous>, transform_indices = @transform_3, window_bounds = array<i64: 128, 384>}, {pipeline_mode = #tpu.pipeline_mode<synchronous>, transform_indices = @transform_4, window_bounds = array<i64: 1, 384>}, {pipeline_mode = #tpu.pipeline_mode<synchronous>, transform_indices = @transform_5, window_bounds = array<i64: 1, 384>}, {pipeline_mode = #tpu.pipeline_mode<synchronous>, transform_indices = @transform_6, window_bounds = array<i64: 128, 128>}, {pipeline_mode = #tpu.pipeline_mode<synchronous>, transform_indices = @transform_7, window_bounds = array<i64: 1, 128>}, {transform_indices = @transform_8, window_bounds = array<i64: 8, 8, 128>}, {transform_indices = @transform_9, window_bounds = array<i64: 8, 128>}, {transform_indices = @transform_10, window_bounds = array<i64: 1, 8, 128>}, {transform_indices = @transform_11, window_bounds = array<i64: 1, 8, 128>}]} {
    %c0 = arith.constant 0 : index
    %c0_0 = arith.constant 0 : index
    %c0_1 = arith.constant 0 : index
    %0 = vector.load %arg1[%c0, %c0_0, %c0_1] : memref<8x8x128xbf16, #tpu.memory_space<vmem>>, vector<8x8x128xbf16>
    %1 = vector.shape_cast %0 : vector<8x8x128xbf16> to vector<64x128xbf16>
    %c0_2 = arith.constant 0 : index
    %c0_3 = arith.constant 0 : index
    %2 = vector.load %arg3[%c0_2, %c0_3] : memref<128x384xbf16, #tpu.memory_space<vmem>>, vector<128x384xbf16>
    %cst = arith.constant dense<0.000000e+00> : vector<64x384xf32>
    %3 = tpu.matmul %1, %2, %cst {dimension_numbers = #tpu.dot_dimension_numbers<[1], [0], [0], [1], [0, 0, 1, 1], [], []>} : vector<64x128xbf16>, vector<128x384xbf16>, vector<64x384xf32> -> vector<64x384xf32>
    %c0_4 = arith.constant 0 : index
    %c0_5 = arith.constant 0 : index
    %4 = vector.load %arg5[%c0_4, %c0_5] : memref<1x384xf32, #tpu.memory_space<vmem>>, vector<1x384xf32>
    %5 = vector.broadcast %4 : vector<1x384xf32> to vector<64x384xf32>
    %6 = arith.addf %3, %5 : vector<64x384xf32>
    %c0_6 = arith.constant 0 : index
    %c0_7 = arith.constant 0 : index
    %7 = vector.load %arg13[%c0_6, %c0_7] : memref<64x384xf32, #tpu.memory_space<vmem>>, vector<64x384xf32>
    tpu.vector_store %arg13[%c0_6, %c0_7], %6 {strides = array<i32>} : memref<64x384xf32, #tpu.memory_space<vmem>>, vector<64x384xf32>,
    %c0_8 = arith.constant 0 : index
    %c0_9 = arith.constant 0 : index
    %8 = vector.load %arg2[%c0_8, %c0_9] : memref<8x128xf32, #tpu.memory_space<vmem>>, vector<8x128xf32>
    %c0_10 = arith.constant 0 : index
    %c0_11 = arith.constant 0 : index
    %9 = vector.load %arg15[%c0_10, %c0_11] : memref<8x128xf32, #tpu.memory_space<vmem>>, vector<8x128xf32>
    tpu.vector_store %arg15[%c0_10, %c0_11], %8 {strides = array<i32>} : memref<8x128xf32, #tpu.memory_space<vmem>>, vector<8x128xf32>,
    %c0_12 = arith.constant 0 : index
    %c0_13 = arith.constant 0 : index
    %10 = vector.load %arg4[%c0_12, %c0_13] : memref<128x384xbf16, #tpu.memory_space<vmem>>, vector<128x384xbf16>
    %c0_14 = arith.constant 0 : index
    %c0_15 = arith.constant 0 : index
    %11 = vector.load %arg6[%c0_14, %c0_15] : memref<1x384xf32, #tpu.memory_space<vmem>>, vector<1x384xf32>
    %c0_16 = arith.constant 0 : index
    %c0_17 = arith.constant 0 : index
    %12 = vector.load %arg15[%c0_16, %c0_17] : memref<8x128xf32, #tpu.memory_space<vmem>>, vector<8x128xf32>
    %c0_18 = arith.constant 0 : index
    %c0_19 = arith.constant 0 : index
    %13 = vector.load %arg13[%c0_18, %c0_19] : memref<64x384xf32, #tpu.memory_space<vmem>>, vector<8x384xf32>
    %14 = arith.truncf %12 : vector<8x128xf32> to vector<8x128xbf16>
    %cst_20 = arith.constant dense<0.000000e+00> : vector<8x384xf32>
    %15 = tpu.matmul %14, %10, %cst_20 {dimension_numbers = #tpu.dot_dimension_numbers<[1], [0], [0], [1], [0, 0, 1, 1], [], []>} : vector<8x128xbf16>, vector<128x384xbf16>, vector<8x384xf32> -> vector<8x384xf32>
    %16 = vector.broadcast %11 : vector<1x384xf32> to vector<8x384xf32>
    %17 = arith.addf %15, %16 : vector<8x384xf32>
    %18 = vector.extract_strided_slice %13 {offsets = [0, 0], sizes = [8, 128], strides = [1, 1]} : vector<8x384xf32> to vector<8x128xf32>
    %19 = vector.extract_strided_slice %17 {offsets = [0, 0], sizes = [8, 128], strides = [1, 1]} : vector<8x384xf32> to vector<8x128xf32>
    %20 = arith.addf %18, %19 : vector<8x128xf32>
    %21 = arith.negf %20 : vector<8x128xf32>
    %22 = math.exp %21 : vector<8x128xf32>
    %cst_21 = arith.constant 1.000000e+00 : f32
    %23 = vector.broadcast %cst_21 : f32 to vector<8x128xf32>
    %24 = arith.addf %23, %22 : vector<8x128xf32>
    %25 = arith.divf %23, %24 : vector<8x128xf32>
    %26 = vector.extract_strided_slice %13 {offsets = [0, 128], sizes = [8, 128], strides = [1, 1]} : vector<8x384xf32> to vector<8x128xf32>
    %27 = vector.extract_strided_slice %17 {offsets = [0, 128], sizes = [8, 128], strides = [1, 1]} : vector<8x384xf32> to vector<8x128xf32>
    %28 = arith.addf %26, %27 : vector<8x128xf32>
    %29 = arith.negf %28 : vector<8x128xf32>
    %30 = math.exp %29 : vector<8x128xf32>
    %cst_22 = arith.constant 1.000000e+00 : f32
    %31 = vector.broadcast %cst_22 : f32 to vector<8x128xf32>
    %32 = arith.addf %31, %30 : vector<8x128xf32>
    %33 = arith.divf %31, %32 : vector<8x128xf32>
    %34 = vector.extract_strided_slice %13 {offsets = [0, 256], sizes = [8, 128], strides = [1, 1]} : vector<8x384xf32> to vector<8x128xf32>
    %35 = vector.extract_strided_slice %17 {offsets = [0, 256], sizes = [8, 128], strides = [1, 1]} : vector<8x384xf32> to vector<8x128xf32>
    %36 = arith.mulf %25, %35 : vector<8x128xf32>
    %37 = arith.addf %34, %36 : vector<8x128xf32>
    %38 = math.tanh %37 : vector<8x128xf32>
    %cst_23 = arith.constant 1.000000e+00 : f32
    %39 = vector.broadcast %cst_23 : f32 to vector<8x128xf32>
    %40 = arith.subf %39, %33 : vector<8x128xf32>
    %41 = arith.mulf %40, %38 : vector<8x128xf32>
    %42 = arith.mulf %33, %12 : vector<8x128xf32>
    %43 = arith.addf %41, %42 : vector<8x128xf32>
    %c0_24 = arith.constant 0 : index
    %c0_25 = arith.constant 0 : index
    %44 = vector.load %arg15[%c0_24, %c0_25] : memref<8x128xf32, #tpu.memory_space<vmem>>, vector<8x128xf32>
    tpu.vector_store %arg15[%c0_24, %c0_25], %43 {strides = array<i32>} : memref<8x128xf32, #tpu.memory_space<vmem>>, vector<8x128xf32>,
    %c0_26 = arith.constant 0 : index
    %c0_27 = arith.constant 0 : index
    %45 = vector.load %arg14[%c0_26, %c0_27] : memref<64x128xf32, #tpu.memory_space<vmem>>, vector<8x128xf32>
    tpu.vector_store %arg14[%c0_26, %c0_27], %43 {strides = array<i32>} : memref<64x128xf32, #tpu.memory_space<vmem>>, vector<8x128xf32>,
    %c0_28 = arith.constant 0 : index
    %c0_29 = arith.constant 0 : index
    %46 = vector.load %arg15[%c0_28, %c0_29] : memref<8x128xf32, #tpu.memory_space<vmem>>, vector<8x128xf32>
    %c8 = arith.constant 8 : index
    %c0_30 = arith.constant 0 : index
    %47 = vector.load %arg13[%c8, %c0_30] : memref<64x384xf32, #tpu.memory_space<vmem>>, vector<8x384xf32>
    %48 = arith.truncf %46 : vector<8x128xf32> to vector<8x128xbf16>
    %cst_31 = arith.constant dense<0.000000e+00> : vector<8x384xf32>
    %49 = tpu.matmul %48, %10, %cst_31 {dimension_numbers = #tpu.dot_dimension_numbers<[1], [0], [0], [1], [0, 0, 1, 1], [], []>} : vector<8x128xbf16>, vector<128x384xbf16>, vector<8x384xf32> -> vector<8x384xf32>
    %50 = vector.broadcast %11 : vector<1x384xf32> to vector<8x384xf32>
    %51 = arith.addf %49, %50 : vector<8x384xf32>
    %52 = vector.extract_strided_slice %47 {offsets = [0, 0], sizes = [8, 128], strides = [1, 1]} : vector<8x384xf32> to vector<8x128xf32>
    %53 = vector.extract_strided_slice %51 {offsets = [0, 0], sizes = [8, 128], strides = [1, 1]} : vector<8x384xf32> to vector<8x128xf32>
    %54 = arith.addf %52, %53 : vector<8x128xf32>
    %55 = arith.negf %54 : vector<8x128xf32>
    %56 = math.exp %55 : vector<8x128xf32>
    %cst_32 = arith.constant 1.000000e+00 : f32
    %57 = vector.broadcast %cst_32 : f32 to vector<8x128xf32>
    %58 = arith.addf %57, %56 : vector<8x128xf32>
    %59 = arith.divf %57, %58 : vector<8x128xf32>
    %60 = vector.extract_strided_slice %47 {offsets = [0, 128], sizes = [8, 128], strides = [1, 1]} : vector<8x384xf32> to vector<8x128xf32>
    %61 = vector.extract_strided_slice %51 {offsets = [0, 128], sizes = [8, 128], strides = [1, 1]} : vector<8x384xf32> to vector<8x128xf32>
    %62 = arith.addf %60, %61 : vector<8x128xf32>
    %63 = arith.negf %62 : vector<8x128xf32>
    %64 = math.exp %63 : vector<8x128xf32>
    %cst_33 = arith.constant 1.000000e+00 : f32
    %65 = vector.broadcast %cst_33 : f32 to vector<8x128xf32>
    %66 = arith.addf %65, %64 : vector<8x128xf32>
    %67 = arith.divf %65, %66 : vector<8x128xf32>
    %68 = vector.extract_strided_slice %47 {offsets = [0, 256], sizes = [8, 128], strides = [1, 1]} : vector<8x384xf32> to vector<8x128xf32>
    %69 = vector.extract_strided_slice %51 {offsets = [0, 256], sizes = [8, 128], strides = [1, 1]} : vector<8x384xf32> to vector<8x128xf32>
    %70 = arith.mulf %59, %69 : vector<8x128xf32>
    %71 = arith.addf %68, %70 : vector<8x128xf32>
    %72 = math.tanh %71 : vector<8x128xf32>
    %cst_34 = arith.constant 1.000000e+00 : f32
    %73 = vector.broadcast %cst_34 : f32 to vector<8x128xf32>
    %74 = arith.subf %73, %67 : vector<8x128xf32>
    %75 = arith.mulf %74, %72 : vector<8x128xf32>
    %76 = arith.mulf %67, %46 : vector<8x128xf32>
    %77 = arith.addf %75, %76 : vector<8x128xf32>
    %c0_35 = arith.constant 0 : index
    %c0_36 = arith.constant 0 : index
    %78 = vector.load %arg15[%c0_35, %c0_36] : memref<8x128xf32, #tpu.memory_space<vmem>>, vector<8x128xf32>
    tpu.vector_store %arg15[%c0_35, %c0_36], %77 {strides = array<i32>} : memref<8x128xf32, #tpu.memory_space<vmem>>, vector<8x128xf32>,
    %c8_37 = arith.constant 8 : index
    %c0_38 = arith.constant 0 : index
    %79 = vector.load %arg14[%c8_37, %c0_38] : memref<64x128xf32, #tpu.memory_space<vmem>>, vector<8x128xf32>
    tpu.vector_store %arg14[%c8_37, %c0_38], %77 {strides = array<i32>} : memref<64x128xf32, #tpu.memory_space<vmem>>, vector<8x128xf32>,
    %c0_39 = arith.constant 0 : index
    %c0_40 = arith.constant 0 : index
    %80 = vector.load %arg15[%c0_39, %c0_40] : memref<8x128xf32, #tpu.memory_space<vmem>>, vector<8x128xf32>
    %c16 = arith.constant 16 : index
    %c0_41 = arith.constant 0 : index
    %81 = vector.load %arg13[%c16, %c0_41] : memref<64x384xf32, #tpu.memory_space<vmem>>, vector<8x384xf32>
    %82 = arith.truncf %80 : vector<8x128xf32> to vector<8x128xbf16>
    %cst_42 = arith.constant dense<0.000000e+00> : vector<8x384xf32>
    %83 = tpu.matmul %82, %10, %cst_42 {dimension_numbers = #tpu.dot_dimension_numbers<[1], [0], [0], [1], [0, 0, 1, 1], [], []>} : vector<8x128xbf16>, vector<128x384xbf16>, vector<8x384xf32> -> vector<8x384xf32>
    %84 = vector.broadcast %11 : vector<1x384xf32> to vector<8x384xf32>
    %85 = arith.addf %83, %84 : vector<8x384xf32>
    %86 = vector.extract_strided_slice %81 {offsets = [0, 0], sizes = [8, 128], strides = [1, 1]} : vector<8x384xf32> to vector<8x128xf32>
    %87 = vector.extract_strided_slice %85 {offsets = [0, 0], sizes = [8, 128], strides = [1, 1]} : vector<8x384xf32> to vector<8x128xf32>
    %88 = arith.addf %86, %87 : vector<8x128xf32>
    %89 = arith.negf %88 : vector<8x128xf32>
    %90 = math.exp %89 : vector<8x128xf32>
    %cst_43 = arith.constant 1.000000e+00 : f32
    %91 = vector.broadcast %cst_43 : f32 to vector<8x128xf32>
    %92 = arith.addf %91, %90 : vector<8x128xf32>
    %93 = arith.divf %91, %92 : vector<8x128xf32>
    %94 = vector.extract_strided_slice %81 {offsets = [0, 128], sizes = [8, 128], strides = [1, 1]} : vector<8x384xf32> to vector<8x128xf32>
    %95 = vector.extract_strided_slice %85 {offsets = [0, 128], sizes = [8, 128], strides = [1, 1]} : vector<8x384xf32> to vector<8x128xf32>
    %96 = arith.addf %94, %95 : vector<8x128xf32>
    %97 = arith.negf %96 : vector<8x128xf32>
    %98 = math.exp %97 : vector<8x128xf32>
    %cst_44 = arith.constant 1.000000e+00 : f32
    %99 = vector.broadcast %cst_44 : f32 to vector<8x128xf32>
    %100 = arith.addf %99, %98 : vector<8x128xf32>
    %101 = arith.divf %99, %100 : vector<8x128xf32>
    %102 = vector.extract_strided_slice %81 {offsets = [0, 256], sizes = [8, 128], strides = [1, 1]} : vector<8x384xf32> to vector<8x128xf32>
    %103 = vector.extract_strided_slice %85 {offsets = [0, 256], sizes = [8, 128], strides = [1, 1]} : vector<8x384xf32> to vector<8x128xf32>
    %104 = arith.mulf %93, %103 : vector<8x128xf32>
    %105 = arith.addf %102, %104 : vector<8x128xf32>
    %106 = math.tanh %105 : vector<8x128xf32>
    %cst_45 = arith.constant 1.000000e+00 : f32
    %107 = vector.broadcast %cst_45 : f32 to vector<8x128xf32>
    %108 = arith.subf %107, %101 : vector<8x128xf32>
    %109 = arith.mulf %108, %106 : vector<8x128xf32>
    %110 = arith.mulf %101, %80 : vector<8x128xf32>
    %111 = arith.addf %109, %110 : vector<8x128xf32>
    %c0_46 = arith.constant 0 : index
    %c0_47 = arith.constant 0 : index
    %112 = vector.load %arg15[%c0_46, %c0_47] : memref<8x128xf32, #tpu.memory_space<vmem>>, vector<8x128xf32>
    tpu.vector_store %arg15[%c0_46, %c0_47], %111 {strides = array<i32>} : memref<8x128xf32, #tpu.memory_space<vmem>>, vector<8x128xf32>,
    %c16_48 = arith.constant 16 : index
    %c0_49 = arith.constant 0 : index
    %113 = vector.load %arg14[%c16_48, %c0_49] : memref<64x128xf32, #tpu.memory_space<vmem>>, vector<8x128xf32>
    tpu.vector_store %arg14[%c16_48, %c0_49], %111 {strides = array<i32>} : memref<64x128xf32, #tpu.memory_space<vmem>>, vector<8x128xf32>,
    %c0_50 = arith.constant 0 : index
    %c0_51 = arith.constant 0 : index
    %114 = vector.load %arg15[%c0_50, %c0_51] : memref<8x128xf32, #tpu.memory_space<vmem>>, vector<8x128xf32>
    %c24 = arith.constant 24 : index
    %c0_52 = arith.constant 0 : index
    %115 = vector.load %arg13[%c24, %c0_52] : memref<64x384xf32, #tpu.memory_space<vmem>>, vector<8x384xf32>
    %116 = arith.truncf %114 : vector<8x128xf32> to vector<8x128xbf16>
    %cst_53 = arith.constant dense<0.000000e+00> : vector<8x384xf32>
    %117 = tpu.matmul %116, %10, %cst_53 {dimension_numbers = #tpu.dot_dimension_numbers<[1], [0], [0], [1], [0, 0, 1, 1], [], []>} : vector<8x128xbf16>, vector<128x384xbf16>, vector<8x384xf32> -> vector<8x384xf32>
    %118 = vector.broadcast %11 : vector<1x384xf32> to vector<8x384xf32>
    %119 = arith.addf %117, %118 : vector<8x384xf32>
    %120 = vector.extract_strided_slice %115 {offsets = [0, 0], sizes = [8, 128], strides = [1, 1]} : vector<8x384xf32> to vector<8x128xf32>
    %121 = vector.extract_strided_slice %119 {offsets = [0, 0], sizes = [8, 128], strides = [1, 1]} : vector<8x384xf32> to vector<8x128xf32>
    %122 = arith.addf %120, %121 : vector<8x128xf32>
    %123 = arith.negf %122 : vector<8x128xf32>
    %124 = math.exp %123 : vector<8x128xf32>
    %cst_54 = arith.constant 1.000000e+00 : f32
    %125 = vector.broadcast %cst_54 : f32 to vector<8x128xf32>
    %126 = arith.addf %125, %124 : vector<8x128xf32>
    %127 = arith.divf %125, %126 : vector<8x128xf32>
    %128 = vector.extract_strided_slice %115 {offsets = [0, 128], sizes = [8, 128], strides = [1, 1]} : vector<8x384xf32> to vector<8x128xf32>
    %129 = vector.extract_strided_slice %119 {offsets = [0, 128], sizes = [8, 128], strides = [1, 1]} : vector<8x384xf32> to vector<8x128xf32>
    %130 = arith.addf %128, %129 : vector<8x128xf32>
    %131 = arith.negf %130 : vector<8x128xf32>
    %132 = math.exp %131 : vector<8x128xf32>
    %cst_55 = arith.constant 1.000000e+00 : f32
    %133 = vector.broadcast %cst_55 : f32 to vector<8x128xf32>
    %134 = arith.addf %133, %132 : vector<8x128xf32>
    %135 = arith.divf %133, %134 : vector<8x128xf32>
    %136 = vector.extract_strided_slice %115 {offsets = [0, 256], sizes = [8, 128], strides = [1, 1]} : vector<8x384xf32> to vector<8x128xf32>
    %137 = vector.extract_strided_slice %119 {offsets = [0, 256], sizes = [8, 128], strides = [1, 1]} : vector<8x384xf32> to vector<8x128xf32>
    %138 = arith.mulf %127, %137 : vector<8x128xf32>
    %139 = arith.addf %136, %138 : vector<8x128xf32>
    %140 = math.tanh %139 : vector<8x128xf32>
    %cst_56 = arith.constant 1.000000e+00 : f32
    %141 = vector.broadcast %cst_56 : f32 to vector<8x128xf32>
    %142 = arith.subf %141, %135 : vector<8x128xf32>
    %143 = arith.mulf %142, %140 : vector<8x128xf32>
    %144 = arith.mulf %135, %114 : vector<8x128xf32>
    %145 = arith.addf %143, %144 : vector<8x128xf32>
    %c0_57 = arith.constant 0 : index
    %c0_58 = arith.constant 0 : index
    %146 = vector.load %arg15[%c0_57, %c0_58] : memref<8x128xf32, #tpu.memory_space<vmem>>, vector<8x128xf32>
    tpu.vector_store %arg15[%c0_57, %c0_58], %145 {strides = array<i32>} : memref<8x128xf32, #tpu.memory_space<vmem>>, vector<8x128xf32>,
    %c24_59 = arith.constant 24 : index
    %c0_60 = arith.constant 0 : index
    %147 = vector.load %arg14[%c24_59, %c0_60] : memref<64x128xf32, #tpu.memory_space<vmem>>, vector<8x128xf32>
    tpu.vector_store %arg14[%c24_59, %c0_60], %145 {strides = array<i32>} : memref<64x128xf32, #tpu.memory_space<vmem>>, vector<8x128xf32>,
    %c0_61 = arith.constant 0 : index
    %c0_62 = arith.constant 0 : index
    %148 = vector.load %arg15[%c0_61, %c0_62] : memref<8x128xf32, #tpu.memory_space<vmem>>, vector<8x128xf32>
    %c32 = arith.constant 32 : index
    %c0_63 = arith.constant 0 : index
    %149 = vector.load %arg13[%c32, %c0_63] : memref<64x384xf32, #tpu.memory_space<vmem>>, vector<8x384xf32>
    %150 = arith.truncf %148 : vector<8x128xf32> to vector<8x128xbf16>
    %cst_64 = arith.constant dense<0.000000e+00> : vector<8x384xf32>
    %151 = tpu.matmul %150, %10, %cst_64 {dimension_numbers = #tpu.dot_dimension_numbers<[1], [0], [0], [1], [0, 0, 1, 1], [], []>} : vector<8x128xbf16>, vector<128x384xbf16>, vector<8x384xf32> -> vector<8x384xf32>
    %152 = vector.broadcast %11 : vector<1x384xf32> to vector<8x384xf32>
    %153 = arith.addf %151, %152 : vector<8x384xf32>
    %154 = vector.extract_strided_slice %149 {offsets = [0, 0], sizes = [8, 128], strides = [1, 1]} : vector<8x384xf32> to vector<8x128xf32>
    %155 = vector.extract_strided_slice %153 {offsets = [0, 0], sizes = [8, 128], strides = [1, 1]} : vector<8x384xf32> to vector<8x128xf32>
    %156 = arith.addf %154, %155 : vector<8x128xf32>
    %157 = arith.negf %156 : vector<8x128xf32>
    %158 = math.exp %157 : vector<8x128xf32>
    %cst_65 = arith.constant 1.000000e+00 : f32
    %159 = vector.broadcast %cst_65 : f32 to vector<8x128xf32>
    %160 = arith.addf %159, %158 : vector<8x128xf32>
    %161 = arith.divf %159, %160 : vector<8x128xf32>
    %162 = vector.extract_strided_slice %149 {offsets = [0, 128], sizes = [8, 128], strides = [1, 1]} : vector<8x384xf32> to vector<8x128xf32>
    %163 = vector.extract_strided_slice %153 {offsets = [0, 128], sizes = [8, 128], strides = [1, 1]} : vector<8x384xf32> to vector<8x128xf32>
    %164 = arith.addf %162, %163 : vector<8x128xf32>
    %165 = arith.negf %164 : vector<8x128xf32>
    %166 = math.exp %165 : vector<8x128xf32>
    %cst_66 = arith.constant 1.000000e+00 : f32
    %167 = vector.broadcast %cst_66 : f32 to vector<8x128xf32>
    %168 = arith.addf %167, %166 : vector<8x128xf32>
    %169 = arith.divf %167, %168 : vector<8x128xf32>
    %170 = vector.extract_strided_slice %149 {offsets = [0, 256], sizes = [8, 128], strides = [1, 1]} : vector<8x384xf32> to vector<8x128xf32>
    %171 = vector.extract_strided_slice %153 {offsets = [0, 256], sizes = [8, 128], strides = [1, 1]} : vector<8x384xf32> to vector<8x128xf32>
    %172 = arith.mulf %161, %171 : vector<8x128xf32>
    %173 = arith.addf %170, %172 : vector<8x128xf32>
    %174 = math.tanh %173 : vector<8x128xf32>
    %cst_67 = arith.constant 1.000000e+00 : f32
    %175 = vector.broadcast %cst_67 : f32 to vector<8x128xf32>
    %176 = arith.subf %175, %169 : vector<8x128xf32>
    %177 = arith.mulf %176, %174 : vector<8x128xf32>
    %178 = arith.mulf %169, %148 : vector<8x128xf32>
    %179 = arith.addf %177, %178 : vector<8x128xf32>
    %c0_68 = arith.constant 0 : index
    %c0_69 = arith.constant 0 : index
    %180 = vector.load %arg15[%c0_68, %c0_69] : memref<8x128xf32, #tpu.memory_space<vmem>>, vector<8x128xf32>
    tpu.vector_store %arg15[%c0_68, %c0_69], %179 {strides = array<i32>} : memref<8x128xf32, #tpu.memory_space<vmem>>, vector<8x128xf32>,
    %c32_70 = arith.constant 32 : index
    %c0_71 = arith.constant 0 : index
    %181 = vector.load %arg14[%c32_70, %c0_71] : memref<64x128xf32, #tpu.memory_space<vmem>>, vector<8x128xf32>
    tpu.vector_store %arg14[%c32_70, %c0_71], %179 {strides = array<i32>} : memref<64x128xf32, #tpu.memory_space<vmem>>, vector<8x128xf32>,
    %c0_72 = arith.constant 0 : index
    %c0_73 = arith.constant 0 : index
    %182 = vector.load %arg15[%c0_72, %c0_73] : memref<8x128xf32, #tpu.memory_space<vmem>>, vector<8x128xf32>
    %c40 = arith.constant 40 : index
    %c0_74 = arith.constant 0 : index
    %183 = vector.load %arg13[%c40, %c0_74] : memref<64x384xf32, #tpu.memory_space<vmem>>, vector<8x384xf32>
    %184 = arith.truncf %182 : vector<8x128xf32> to vector<8x128xbf16>
    %cst_75 = arith.constant dense<0.000000e+00> : vector<8x384xf32>
    %185 = tpu.matmul %184, %10, %cst_75 {dimension_numbers = #tpu.dot_dimension_numbers<[1], [0], [0], [1], [0, 0, 1, 1], [], []>} : vector<8x128xbf16>, vector<128x384xbf16>, vector<8x384xf32> -> vector<8x384xf32>
    %186 = vector.broadcast %11 : vector<1x384xf32> to vector<8x384xf32>
    %187 = arith.addf %185, %186 : vector<8x384xf32>
    %188 = vector.extract_strided_slice %183 {offsets = [0, 0], sizes = [8, 128], strides = [1, 1]} : vector<8x384xf32> to vector<8x128xf32>
    %189 = vector.extract_strided_slice %187 {offsets = [0, 0], sizes = [8, 128], strides = [1, 1]} : vector<8x384xf32> to vector<8x128xf32>
    %190 = arith.addf %188, %189 : vector<8x128xf32>
    %191 = arith.negf %190 : vector<8x128xf32>
    %192 = math.exp %191 : vector<8x128xf32>
    %cst_76 = arith.constant 1.000000e+00 : f32
    %193 = vector.broadcast %cst_76 : f32 to vector<8x128xf32>
    %194 = arith.addf %193, %192 : vector<8x128xf32>
    %195 = arith.divf %193, %194 : vector<8x128xf32>
    %196 = vector.extract_strided_slice %183 {offsets = [0, 128], sizes = [8, 128], strides = [1, 1]} : vector<8x384xf32> to vector<8x128xf32>
    %197 = vector.extract_strided_slice %187 {offsets = [0, 128], sizes = [8, 128], strides = [1, 1]} : vector<8x384xf32> to vector<8x128xf32>
    %198 = arith.addf %196, %197 : vector<8x128xf32>
    %199 = arith.negf %198 : vector<8x128xf32>
    %200 = math.exp %199 : vector<8x128xf32>
    %cst_77 = arith.constant 1.000000e+00 : f32
    %201 = vector.broadcast %cst_77 : f32 to vector<8x128xf32>
    %202 = arith.addf %201, %200 : vector<8x128xf32>
    %203 = arith.divf %201, %202 : vector<8x128xf32>
    %204 = vector.extract_strided_slice %183 {offsets = [0, 256], sizes = [8, 128], strides = [1, 1]} : vector<8x384xf32> to vector<8x128xf32>
    %205 = vector.extract_strided_slice %187 {offsets = [0, 256], sizes = [8, 128], strides = [1, 1]} : vector<8x384xf32> to vector<8x128xf32>
    %206 = arith.mulf %195, %205 : vector<8x128xf32>
    %207 = arith.addf %204, %206 : vector<8x128xf32>
    %208 = math.tanh %207 : vector<8x128xf32>
    %cst_78 = arith.constant 1.000000e+00 : f32
    %209 = vector.broadcast %cst_78 : f32 to vector<8x128xf32>
    %210 = arith.subf %209, %203 : vector<8x128xf32>
    %211 = arith.mulf %210, %208 : vector<8x128xf32>
    %212 = arith.mulf %203, %182 : vector<8x128xf32>
    %213 = arith.addf %211, %212 : vector<8x128xf32>
    %c0_79 = arith.constant 0 : index
    %c0_80 = arith.constant 0 : index
    %214 = vector.load %arg15[%c0_79, %c0_80] : memref<8x128xf32, #tpu.memory_space<vmem>>, vector<8x128xf32>
    tpu.vector_store %arg15[%c0_79, %c0_80], %213 {strides = array<i32>} : memref<8x128xf32, #tpu.memory_space<vmem>>, vector<8x128xf32>,
    %c40_81 = arith.constant 40 : index
    %c0_82 = arith.constant 0 : index
    %215 = vector.load %arg14[%c40_81, %c0_82] : memref<64x128xf32, #tpu.memory_space<vmem>>, vector<8x128xf32>
    tpu.vector_store %arg14[%c40_81, %c0_82], %213 {strides = array<i32>} : memref<64x128xf32, #tpu.memory_space<vmem>>, vector<8x128xf32>,
    %c0_83 = arith.constant 0 : index
    %c0_84 = arith.constant 0 : index
    %216 = vector.load %arg15[%c0_83, %c0_84] : memref<8x128xf32, #tpu.memory_space<vmem>>, vector<8x128xf32>
    %c48 = arith.constant 48 : index
    %c0_85 = arith.constant 0 : index
    %217 = vector.load %arg13[%c48, %c0_85] : memref<64x384xf32, #tpu.memory_space<vmem>>, vector<8x384xf32>
    %218 = arith.truncf %216 : vector<8x128xf32> to vector<8x128xbf16>
    %cst_86 = arith.constant dense<0.000000e+00> : vector<8x384xf32>
    %219 = tpu.matmul %218, %10, %cst_86 {dimension_numbers = #tpu.dot_dimension_numbers<[1], [0], [0], [1], [0, 0, 1, 1], [], []>} : vector<8x128xbf16>, vector<128x384xbf16>, vector<8x384xf32> -> vector<8x384xf32>
    %220 = vector.broadcast %11 : vector<1x384xf32> to vector<8x384xf32>
    %221 = arith.addf %219, %220 : vector<8x384xf32>
    %222 = vector.extract_strided_slice %217 {offsets = [0, 0], sizes = [8, 128], strides = [1, 1]} : vector<8x384xf32> to vector<8x128xf32>
    %223 = vector.extract_strided_slice %221 {offsets = [0, 0], sizes = [8, 128], strides = [1, 1]} : vector<8x384xf32> to vector<8x128xf32>
    %224 = arith.addf %222, %223 : vector<8x128xf32>
    %225 = arith.negf %224 : vector<8x128xf32>
    %226 = math.exp %225 : vector<8x128xf32>
    %cst_87 = arith.constant 1.000000e+00 : f32
    %227 = vector.broadcast %cst_87 : f32 to vector<8x128xf32>
    %228 = arith.addf %227, %226 : vector<8x128xf32>
    %229 = arith.divf %227, %228 : vector<8x128xf32>
    %230 = vector.extract_strided_slice %217 {offsets = [0, 128], sizes = [8, 128], strides = [1, 1]} : vector<8x384xf32> to vector<8x128xf32>
    %231 = vector.extract_strided_slice %221 {offsets = [0, 128], sizes = [8, 128], strides = [1, 1]} : vector<8x384xf32> to vector<8x128xf32>
    %232 = arith.addf %230, %231 : vector<8x128xf32>
    %233 = arith.negf %232 : vector<8x128xf32>
    %234 = math.exp %233 : vector<8x128xf32>
    %cst_88 = arith.constant 1.000000e+00 : f32
    %235 = vector.broadcast %cst_88 : f32 to vector<8x128xf32>
    %236 = arith.addf %235, %234 : vector<8x128xf32>
    %237 = arith.divf %235, %236 : vector<8x128xf32>
    %238 = vector.extract_strided_slice %217 {offsets = [0, 256], sizes = [8, 128], strides = [1, 1]} : vector<8x384xf32> to vector<8x128xf32>
    %239 = vector.extract_strided_slice %221 {offsets = [0, 256], sizes = [8, 128], strides = [1, 1]} : vector<8x384xf32> to vector<8x128xf32>
    %240 = arith.mulf %229, %239 : vector<8x128xf32>
    %241 = arith.addf %238, %240 : vector<8x128xf32>
    %242 = math.tanh %241 : vector<8x128xf32>
    %cst_89 = arith.constant 1.000000e+00 : f32
    %243 = vector.broadcast %cst_89 : f32 to vector<8x128xf32>
    %244 = arith.subf %243, %237 : vector<8x128xf32>
    %245 = arith.mulf %244, %242 : vector<8x128xf32>
    %246 = arith.mulf %237, %216 : vector<8x128xf32>
    %247 = arith.addf %245, %246 : vector<8x128xf32>
    %c0_90 = arith.constant 0 : index
    %c0_91 = arith.constant 0 : index
    %248 = vector.load %arg15[%c0_90, %c0_91] : memref<8x128xf32, #tpu.memory_space<vmem>>, vector<8x128xf32>
    tpu.vector_store %arg15[%c0_90, %c0_91], %247 {strides = array<i32>} : memref<8x128xf32, #tpu.memory_space<vmem>>, vector<8x128xf32>,
    %c48_92 = arith.constant 48 : index
    %c0_93 = arith.constant 0 : index
    %249 = vector.load %arg14[%c48_92, %c0_93] : memref<64x128xf32, #tpu.memory_space<vmem>>, vector<8x128xf32>
    tpu.vector_store %arg14[%c48_92, %c0_93], %247 {strides = array<i32>} : memref<64x128xf32, #tpu.memory_space<vmem>>, vector<8x128xf32>,
    %c0_94 = arith.constant 0 : index
    %c0_95 = arith.constant 0 : index
    %250 = vector.load %arg15[%c0_94, %c0_95] : memref<8x128xf32, #tpu.memory_space<vmem>>, vector<8x128xf32>
    %c56 = arith.constant 56 : index
    %c0_96 = arith.constant 0 : index
    %251 = vector.load %arg13[%c56, %c0_96] : memref<64x384xf32, #tpu.memory_space<vmem>>, vector<8x384xf32>
    %252 = arith.truncf %250 : vector<8x128xf32> to vector<8x128xbf16>
    %cst_97 = arith.constant dense<0.000000e+00> : vector<8x384xf32>
    %253 = tpu.matmul %252, %10, %cst_97 {dimension_numbers = #tpu.dot_dimension_numbers<[1], [0], [0], [1], [0, 0, 1, 1], [], []>} : vector<8x128xbf16>, vector<128x384xbf16>, vector<8x384xf32> -> vector<8x384xf32>
    %254 = vector.broadcast %11 : vector<1x384xf32> to vector<8x384xf32>
    %255 = arith.addf %253, %254 : vector<8x384xf32>
    %256 = vector.extract_strided_slice %251 {offsets = [0, 0], sizes = [8, 128], strides = [1, 1]} : vector<8x384xf32> to vector<8x128xf32>
    %257 = vector.extract_strided_slice %255 {offsets = [0, 0], sizes = [8, 128], strides = [1, 1]} : vector<8x384xf32> to vector<8x128xf32>
    %258 = arith.addf %256, %257 : vector<8x128xf32>
    %259 = arith.negf %258 : vector<8x128xf32>
    %260 = math.exp %259 : vector<8x128xf32>
    %cst_98 = arith.constant 1.000000e+00 : f32
    %261 = vector.broadcast %cst_98 : f32 to vector<8x128xf32>
    %262 = arith.addf %261, %260 : vector<8x128xf32>
    %263 = arith.divf %261, %262 : vector<8x128xf32>
    %264 = vector.extract_strided_slice %251 {offsets = [0, 128], sizes = [8, 128], strides = [1, 1]} : vector<8x384xf32> to vector<8x128xf32>
    %265 = vector.extract_strided_slice %255 {offsets = [0, 128], sizes = [8, 128], strides = [1, 1]} : vector<8x384xf32> to vector<8x128xf32>
    %266 = arith.addf %264, %265 : vector<8x128xf32>
    %267 = arith.negf %266 : vector<8x128xf32>
    %268 = math.exp %267 : vector<8x128xf32>
    %cst_99 = arith.constant 1.000000e+00 : f32
    %269 = vector.broadcast %cst_99 : f32 to vector<8x128xf32>
    %270 = arith.addf %269, %268 : vector<8x128xf32>
    %271 = arith.divf %269, %270 : vector<8x128xf32>
    %272 = vector.extract_strided_slice %251 {offsets = [0, 256], sizes = [8, 128], strides = [1, 1]} : vector<8x384xf32> to vector<8x128xf32>
    %273 = vector.extract_strided_slice %255 {offsets = [0, 256], sizes = [8, 128], strides = [1, 1]} : vector<8x384xf32> to vector<8x128xf32>
    %274 = arith.mulf %263, %273 : vector<8x128xf32>
    %275 = arith.addf %272, %274 : vector<8x128xf32>
    %276 = math.tanh %275 : vector<8x128xf32>
    %cst_100 = arith.constant 1.000000e+00 : f32
    %277 = vector.broadcast %cst_100 : f32 to vector<8x128xf32>
    %278 = arith.subf %277, %271 : vector<8x128xf32>
    %279 = arith.mulf %278, %276 : vector<8x128xf32>
    %280 = arith.mulf %271, %250 : vector<8x128xf32>
    %281 = arith.addf %279, %280 : vector<8x128xf32>
    %c0_101 = arith.constant 0 : index
    %c0_102 = arith.constant 0 : index
    %282 = vector.load %arg15[%c0_101, %c0_102] : memref<8x128xf32, #tpu.memory_space<vmem>>, vector<8x128xf32>
    tpu.vector_store %arg15[%c0_101, %c0_102], %281 {strides = array<i32>} : memref<8x128xf32, #tpu.memory_space<vmem>>, vector<8x128xf32>,
    %c56_103 = arith.constant 56 : index
    %c0_104 = arith.constant 0 : index
    %283 = vector.load %arg14[%c56_103, %c0_104] : memref<64x128xf32, #tpu.memory_space<vmem>>, vector<8x128xf32>
    tpu.vector_store %arg14[%c56_103, %c0_104], %281 {strides = array<i32>} : memref<64x128xf32, #tpu.memory_space<vmem>>, vector<8x128xf32>,
    %c0_105 = arith.constant 0 : index
    %c0_106 = arith.constant 0 : index
    %284 = vector.load %arg15[%c0_105, %c0_106] : memref<8x128xf32, #tpu.memory_space<vmem>>, vector<8x128xf32>
    %c0_107 = arith.constant 0 : index
    %c0_108 = arith.constant 0 : index
    %285 = vector.load %arg10[%c0_107, %c0_108] : memref<8x128xf32, #tpu.memory_space<vmem>>, vector<8x128xf32>
    tpu.vector_store %arg10[%c0_107, %c0_108], %284 {strides = array<i32>} : memref<8x128xf32, #tpu.memory_space<vmem>>, vector<8x128xf32>,
    %c0_109 = arith.constant 0 : index
    %c0_110 = arith.constant 0 : index
    %286 = vector.load %arg14[%c0_109, %c0_110] : memref<64x128xf32, #tpu.memory_space<vmem>>, vector<64x128xf32>
    %287 = arith.truncf %286 : vector<64x128xf32> to vector<64x128xbf16>
    %c0_111 = arith.constant 0 : index
    %c0_112 = arith.constant 0 : index
    %288 = vector.load %arg7[%c0_111, %c0_112] : memref<128x128xbf16, #tpu.memory_space<vmem>>, vector<128x128xbf16>
    %cst_113 = arith.constant dense<0.000000e+00> : vector<64x128xf32>
    %289 = tpu.matmul %287, %288, %cst_113 {dimension_numbers = #tpu.dot_dimension_numbers<[1], [0], [0], [1], [0, 0, 1, 1], [], []>} : vector<64x128xbf16>, vector<128x128xbf16>, vector<64x128xf32> -> vector<64x128xf32>
    %c0_114 = arith.constant 0 : index
    %c0_115 = arith.constant 0 : index
    %290 = vector.load %arg8[%c0_114, %c0_115] : memref<1x128xf32, #tpu.memory_space<vmem>>, vector<1x128xf32>
    %291 = vector.broadcast %290 : vector<1x128xf32> to vector<64x128xf32>
    %292 = arith.addf %289, %291 : vector<64x128xf32>
    %293 = vector.shape_cast %292 : vector<64x128xf32> to vector<8x8x128xf32>
    %c0_116 = arith.constant 0 : index
    %c0_117 = arith.constant 0 : index
    %c0_118 = arith.constant 0 : index
    %294 = vector.load %arg9[%c0_116, %c0_117, %c0_118] : memref<8x8x128xf32, #tpu.memory_space<vmem>>, vector<8x8x128xf32>
    tpu.vector_store %arg9[%c0_116, %c0_117, %c0_118], %293 {strides = array<i32>} : memref<8x8x128xf32, #tpu.memory_space<vmem>>, vector<8x8x128xf32>,
    %295 = tpu.iota {dimensions = array<i32: 0>} : vector<64x128xi32>
    %c8_i32 = arith.constant 8 : i32
    %296 = arith.muli %arg0, %c8_i32 : i32
    %c8_i32_119 = arith.constant 8 : i32
    %c0_i32 = arith.constant 0 : i32
    %297 = arith.cmpi eq, %c8_i32_119, %c0_i32 : i32
    %c1_i32 = arith.constant 1 : i32
    %298 = arith.select %297, %c1_i32, %c8_i32_119 : i32
    %299 = vector.broadcast %298 : i32 to vector<64x128xi32>
    %300 = arith.remsi %295, %299 : vector<64x128xi32>
    %c0_i32_120 = arith.constant 0 : i32
    %301 = vector.broadcast %c0_i32_120 : i32 to vector<64x128xi32>
    %302 = arith.cmpi ne, %300, %301 : vector<64x128xi32>
    %c0_i32_121 = arith.constant 0 : i32
    %303 = vector.broadcast %c0_i32_121 : i32 to vector<64x128xi32>
    %304 = arith.cmpi slt, %300, %303 : vector<64x128xi32>
    %c0_i32_122 = arith.constant 0 : i32
    %305 = arith.cmpi slt, %298, %c0_i32_122 : i32
    %306 = vector.broadcast %305 : i1 to vector<64x128xi1>
    %307 = vector.broadcast %306 : vector<64x128xi1> to vector<64x128xi1>
    %308 = arith.xori %304, %307 : vector<64x128xi1>
    %309 = arith.andi %308, %302 : vector<64x128xi1>
    %310 = vector.broadcast %298 : i32 to vector<64x128xi32>
    %311 = arith.addi %300, %310 : vector<64x128xi32>
    %312 = arith.select %309, %311, %300 : vector<64x128xi1>, vector<64x128xi32>
    %313 = vector.broadcast %296 : i32 to vector<64x128xi32>
    %314 = arith.addi %313, %312 : vector<64x128xi32>
    %c2_i32 = arith.constant 2 : i32
    %315 = vector.broadcast %c2_i32 : i32 to vector<64x128xi32>
    %316 = arith.cmpi slt, %314, %315 : vector<64x128xi32>
    %317 = arith.extui %316 : vector<64x128xi1> to vector<64x128xi32>
    %318 = arith.sitofp %317 : vector<64x128xi32> to vector<64x128xf32>
    %319 = arith.mulf %292, %318 : vector<64x128xf32>
    %cst_123 = arith.constant dense<0.000000e+00> : vector<128xf32>
    %320 = vector.multi_reduction <add>, %319, %cst_123 [0] : vector<64x128xf32> to vector<128xf32>
    %321 = vector.shape_cast %320 : vector<128xf32> to vector<1x128xf32>
    %322 = arith.mulf %319, %292 : vector<64x128xf32>
    %cst_124 = arith.constant dense<0.000000e+00> : vector<128xf32>
    %323 = vector.multi_reduction <add>, %322, %cst_124 [0] : vector<64x128xf32> to vector<128xf32>
    %324 = vector.shape_cast %323 : vector<128xf32> to vector<1x128xf32>
    %325 = vector.shape_cast %321 : vector<1x128xf32> to vector<1x1x128xf32>
    %326 = vector.broadcast %325 : vector<1x1x128xf32> to vector<1x8x128xf32>
    %c0_125 = arith.constant 0 : index
    %c0_126 = arith.constant 0 : index
    %c0_127 = arith.constant 0 : index
    %327 = vector.load %arg11[%c0_125, %c0_126, %c0_127] : memref<1x8x128xf32, #tpu.memory_space<vmem>>, vector<1x8x128xf32>
    tpu.vector_store %arg11[%c0_125, %c0_126, %c0_127], %326 {strides = array<i32>} : memref<1x8x128xf32, #tpu.memory_space<vmem>>, vector<1x8x128xf32>,
    %328 = vector.shape_cast %324 : vector<1x128xf32> to vector<1x1x128xf32>
    %329 = vector.broadcast %328 : vector<1x1x128xf32> to vector<1x8x128xf32>
    %c0_128 = arith.constant 0 : index
    %c0_129 = arith.constant 0 : index
    %c0_130 = arith.constant 0 : index
    %330 = vector.load %arg12[%c0_128, %c0_129, %c0_130] : memref<1x8x128xf32, #tpu.memory_space<vmem>>, vector<1x8x128xf32>
    tpu.vector_store %arg12[%c0_128, %c0_129, %c0_130], %329 {strides = array<i32>} : memref<1x8x128xf32, #tpu.memory_space<vmem>>, vector<1x8x128xf32>,
    return
  }
  func.func @transform_0(%arg0: i32) -> (i32, i32, i32) {
    %c0_i32 = arith.constant 0 : i32
    %c0_i32_0 = arith.constant 0 : i32
    %c0_i32_1 = arith.constant 0 : i32
    return %c0_i32, %arg0, %c0_i32_0 : i32, i32, i32
  }
  func.func @transform_1(%arg0: i32) -> (i32, i32) {
    %c0_i32 = arith.constant 0 : i32
    %c0_i32_0 = arith.constant 0 : i32
    return %arg0, %c0_i32 : i32, i32
  }
  func.func @transform_2(%arg0: i32) -> (i32, i32) {
    %c0_i32 = arith.constant 0 : i32
    %c0_i32_0 = arith.constant 0 : i32
    %c0_i32_1 = arith.constant 0 : i32
    return %c0_i32, %c0_i32_0 : i32, i32
  }
  func.func @transform_3(%arg0: i32) -> (i32, i32) {
    %c0_i32 = arith.constant 0 : i32
    %c0_i32_0 = arith.constant 0 : i32
    %c0_i32_1 = arith.constant 0 : i32
    return %c0_i32, %c0_i32_0 : i32, i32
  }
  func.func @transform_4(%arg0: i32) -> (i32, i32) {
    %c0_i32 = arith.constant 0 : i32
    %c0_i32_0 = arith.constant 0 : i32
    %c0_i32_1 = arith.constant 0 : i32
    return %c0_i32, %c0_i32_0 : i32, i32
  }
  func.func @transform_5(%arg0: i32) -> (i32, i32) {
    %c0_i32 = arith.constant 0 : i32
    %c0_i32_0 = arith.constant 0 : i32
    %c0_i32_1 = arith.constant 0 : i32
    return %c0_i32, %c0_i32_0 : i32, i32
  }
  func.func @transform_6(%arg0: i32) -> (i32, i32) {
    %c0_i32 = arith.constant 0 : i32
    %c0_i32_0 = arith.constant 0 : i32
    %c0_i32_1 = arith.constant 0 : i32
    return %c0_i32, %c0_i32_0 : i32, i32
  }
  func.func @transform_7(%arg0: i32) -> (i32, i32) {
    %c0_i32 = arith.constant 0 : i32
    %c0_i32_0 = arith.constant 0 : i32
    %c0_i32_1 = arith.constant 0 : i32
    return %c0_i32, %c0_i32_0 : i32, i32
  }
  func.func @transform_8(%arg0: i32) -> (i32, i32, i32) {
    %c0_i32 = arith.constant 0 : i32
    %c0_i32_0 = arith.constant 0 : i32
    %c0_i32_1 = arith.constant 0 : i32
    return %c0_i32, %arg0, %c0_i32_0 : i32, i32, i32
  }
  func.func @transform_9(%arg0: i32) -> (i32, i32) {
    %c0_i32 = arith.constant 0 : i32
    %c0_i32_0 = arith.constant 0 : i32
    return %arg0, %c0_i32 : i32, i32
  }
  func.func @transform_10(%arg0: i32) -> (i32, i32, i32) {
    %c0_i32 = arith.constant 0 : i32
    %c0_i32_0 = arith.constant 0 : i32
    %c0_i32_1 = arith.constant 0 : i32
    return %arg0, %c0_i32, %c0_i32_0 : i32, i32, i32
  }
  func.func @transform_11(%arg0: i32) -> (i32, i32, i32) {
    %c0_i32 = arith.constant 0 : i32
    %c0_i32_0 = arith.constant 0 : i32
    %c0_i32_1 = arith.constant 0 : i32
    return %arg0, %c0_i32, %c0_i32_0 : i32, i32, i32
  }
}

module attributes {stable_mosaic.version = 11 : i64} {
  func.func @bn_relu_kernel(%arg0: i32, %arg1: memref<64x128xf32, #tpu.memory_space<vmem>>, %arg2: memref<1x128xf32, #tpu.memory_space<vmem>>, %arg3: memref<1x128xf32, #tpu.memory_space<vmem>>, %arg4: memref<64x128xf32, #tpu.memory_space<vmem>>) attributes {dimension_semantics = [#tpu.dimension_semantics<parallel>], iteration_bounds = array<i64: 1>, scalar_prefetch = 0 : i64, scratch_operands = 0 : i64, tpu.core_type = #tpu.core_type<tc>, window_params = [{transform_indices = @transform_0, window_bounds = array<i64: 64, 128>}, {pipeline_mode = #tpu.pipeline_mode<synchronous>, transform_indices = @transform_1, window_bounds = array<i64: 1, 128>}, {pipeline_mode = #tpu.pipeline_mode<synchronous>, transform_indices = @transform_2, window_bounds = array<i64: 1, 128>}, {transform_indices = @transform_3, window_bounds = array<i64: 64, 128>}]} {
    %c0 = arith.constant 0 : index
    %c0_0 = arith.constant 0 : index
    %0 = vector.load %arg1[%c0, %c0_0] : memref<64x128xf32, #tpu.memory_space<vmem>>, vector<64x128xf32>
    %c0_1 = arith.constant 0 : index
    %c0_2 = arith.constant 0 : index
    %1 = vector.load %arg2[%c0_1, %c0_2] : memref<1x128xf32, #tpu.memory_space<vmem>>, vector<1x128xf32>
    %2 = vector.broadcast %1 : vector<1x128xf32> to vector<64x128xf32>
    %3 = arith.mulf %0, %2 : vector<64x128xf32>
    %c0_3 = arith.constant 0 : index
    %c0_4 = arith.constant 0 : index
    %4 = vector.load %arg3[%c0_3, %c0_4] : memref<1x128xf32, #tpu.memory_space<vmem>>, vector<1x128xf32>
    %5 = vector.broadcast %4 : vector<1x128xf32> to vector<64x128xf32>
    %6 = arith.addf %3, %5 : vector<64x128xf32>
    %cst = arith.constant 0.000000e+00 : f32
    %7 = vector.broadcast %cst : f32 to vector<64x128xf32>
    %8 = arith.maximumf %6, %7 : vector<64x128xf32>
    %c0_5 = arith.constant 0 : index
    %c0_6 = arith.constant 0 : index
    %9 = vector.load %arg4[%c0_5, %c0_6] : memref<64x128xf32, #tpu.memory_space<vmem>>, vector<64x128xf32>
    tpu.vector_store %arg4[%c0_5, %c0_6], %8 {strides = array<i32>} : memref<64x128xf32, #tpu.memory_space<vmem>>, vector<64x128xf32>,
    return
  }
  func.func @transform_0(%arg0: i32) -> (i32, i32) {
    %c0_i32 = arith.constant 0 : i32
    %c0_i32_0 = arith.constant 0 : i32
    return %arg0, %c0_i32 : i32, i32
  }
  func.func @transform_1(%arg0: i32) -> (i32, i32) {
    %c0_i32 = arith.constant 0 : i32
    %c0_i32_0 = arith.constant 0 : i32
    %c0_i32_1 = arith.constant 0 : i32
    return %c0_i32, %c0_i32_0 : i32, i32
  }
  func.func @transform_2(%arg0: i32) -> (i32, i32) {
    %c0_i32 = arith.constant 0 : i32
    %c0_i32_0 = arith.constant 0 : i32
    %c0_i32_1 = arith.constant 0 : i32
    return %c0_i32, %c0_i32_0 : i32, i32
  }
  func.func @transform_3(%arg0: i32) -> (i32, i32) {
    %c0_i32 = arith.constant 0 : i32
    %c0_i32_0 = arith.constant 0 : i32
    return %arg0, %c0_i32 : i32, i32
  }
}

</mosaic_0001>

<bundles_post_ra>
// kernel: tf_gru_block_forward.3
= control target key start
LH: loop header
LB: loop body
LE: loop exit
PB: predicated region body
PF: predicated region fallthrough
CT: control target
= control target key end

     0   :  { %s148_s0 = inlined_call_operand.vmem [shape: f32[64,128], index: 0, kind: input, shape index: {}]   ;;  %s149_s1 = inlined_call_operand.vmem [shape: f32[1,128], index: 1, kind: input, shape index: {}]   ;;  %s150_s2 = inlined_call_operand.vmem [shape: f32[1,128], index: 2, kind: input, shape index: {}]   ;;  %s151_s3 = inlined_call_operand.vmem [shape: f32[64,128], index: 3, kind: output, shape index: {}]  }
   0x1   :  { %v14_v0 = vld [vmem:[%s148_s0] sm:$0xff]  ;;  %v15_v4 = vld [vmem:[%s148_s0 + $0x8] sm:$0xff]  ;;  %v16_v5 = vld [vmem:[%s148_s0 + $0x10] sm:$0xff] }
   0x2   :  { %v72_v1 = vld [vmem:[%s149_s1] ss:$0 sm:$0xff]  ;;  %v17_v6 = vld [vmem:[%s148_s0 + $0x18] sm:$0xff]  ;;  %v19_v11 = vld [vmem:[%s148_s0 + $0x28] sm:$0xff] }
   0x3   :  { %v73_v2 = vld [vmem:[%s150_s2] ss:$0 sm:$0xff]  ;;  %v29_v3 = vmul.f32 %v72_v1, %v14_v0  ;;  %v30_v7 = vmul.f32 %v72_v1, %v15_v4  ;;  %v31_v8 = vmul.f32 %v72_v1, %v16_v5  ;;  %v32_v9 = vmul.f32 %v72_v1, %v17_v6  ;;  %v20_v12 = vld [vmem:[%s148_s0 + $0x30] sm:$0xff]  ;;  %v21_v17 = vld [vmem:[%s148_s0 + $0x38] sm:$0xff] }
   0x4   :  { %v18_v10 = vld [vmem:[%s148_s0 + $0x20] sm:$0xff]  ;;  %v34_v15 = vmul.f32 %v72_v1, %v19_v11  ;;  %v35_v16 = vmul.f32 %v72_v1, %v20_v12  ;;  %v36_v21 = vmul.f32 %v72_v1, %v21_v17 }
   0x5   :  { %v44_v13 = vadd.f32 %v73_v2, %v29_v3  ;;  %v33_v14 = vmul.f32 %v72_v1, %v18_v10  ;;  %v45_v18 = vadd.f32 %v73_v2, %v30_v7  ;;  %v46_v19 = vadd.f32 %v73_v2, %v31_v8 }
   0x6   :  { %v47_v20 = vadd.f32 %v73_v2, %v32_v9  ;;  %v49_v24 = vadd.f32 %v73_v2, %v34_v15  ;;  %v50_v25 = vadd.f32 %v73_v2, %v35_v16  ;;  %v51_v29 = vadd.f32 %v73_v2, %v36_v21 }
   0x7   :  { %v52_v22 = vmax.f32 %v44_v13, 0.0  ;;  %v48_v23 = vadd.f32 %v73_v2, %v33_v14  ;;  %v53_v26 = vmax.f32 %v45_v18, 0.0  ;;  %v54_v27 = vmax.f32 %v46_v19, 0.0 }
   0x8   :  { %v55_v28 = vmax.f32 %v47_v20, 0.0  ;;  %v57_v31 = vmax.f32 %v49_v24, 0.0  ;;  %v58_v32 = vmax.f32 %v50_v25, 0.0  ;;  %v59_v33 = vmax.f32 %v51_v29, 0.0 }
   0x9   :  { %60 = vst [vmem:[%s151_s3] sm:$0xff] %v52_v22  ;;  %v56_v30 = vmax.f32 %v48_v23, 0.0  ;;  %61 = vst [vmem:[%s151_s3 + $0x8] sm:$0xff] %v53_v26 }
   0xa   :  { %62 = vst [vmem:[%s151_s3 + $0x10] sm:$0xff] %v54_v27  ;;  %63 = vst [vmem:[%s151_s3 + $0x18] sm:$0xff] %v55_v28 }
   0xb   :  { %64 = vst [vmem:[%s151_s3 + $0x20] sm:$0xff] %v56_v30  ;;  %65 = vst [vmem:[%s151_s3 + $0x28] sm:$0xff] %v57_v31 }
   0xc   :  { %66 = vst [vmem:[%s151_s3 + $0x30] sm:$0xff] %v58_v32  ;;  %67 = vst [vmem:[%s151_s3 + $0x38] sm:$0xff] %v59_v33 }

// kernel: tf_gru_block_forward.2
= control target key start
LH: loop header
LB: loop body
LE: loop exit
PB: predicated region body
PF: predicated region fallthrough
CT: control target
= control target key end

     0   :  { %v3269_v1 = vmov 0   ;;  %v3271_v48 = vmov 0.0   ;;  %vm2379_vm0 = vmmov 0   ;;  %v76_v56 = vlaneseq  ;;  %s3257_s2 = inlined_call_operand.vmem [shape: bf16[128,384], index: 2, kind: input, shape index: {}]   ;;  %s3258_s3 = inlined_call_operand.vmem [shape: bf16[128,384], index: 3, kind: input, shape index: {}]   ;;  %s3259_s0 = inlined_call_operand.vmem [shape: bf16[8,8,128], index: 0, kind: input, shape index: {}]   ;;  %s3260_s1 = inlined_call_operand.vmem [shape: f32[8,128], index: 1, kind: input, shape index: {}]   ;;  %s3261_s4 = inlined_call_operand.vmem [shape: f32[1,384], index: 4, kind: input, shape index: {}]   ;;  %s3262_s5 = inlined_call_operand.vmem [shape: f32[1,384], index: 5, kind: input, shape index: {}]   ;;  %s3263_s6 = inlined_call_operand.vmem [shape: bf16[128,128], index: 6, kind: input, shape index: {}]   ;;  %s3264_s7 = inlined_call_operand.vmem [shape: f32[1,128], index: 7, kind: input, shape index: {}]   ;;  %s3265_s8 = inlined_call_operand.vmem [shape: f32[8,8,128], index: 8, kind: output, shape index: {0}]   ;;  %s3266_s9 = inlined_call_operand.vmem [shape: f32[8,128], index: 9, kind: output, shape index: {1}]   ;;  %s3267_s10 = inlined_call_operand.vmem [shape: f32[1,8,128], index: 10, kind: output, shape index: {2}]   ;;  %s3268_s11 = inlined_call_operand.vmem [shape: f32[1,8,128], index: 11, kind: output, shape index: {3}]  }
   0x1   :  { %v2205_v0 = vld [vmem:[%s3257_s2 + $0x4] ss:$12 sps:$4 sm:$0xff]   ;;  %275 = vmatprep.mubr.bf16.mxu1 %v3269_v1  ;;  %621 = vmatprep.mubr.bf16.mxu0 %v3269_v1  ;;  %v2209_v3 = vld [vmem:[%s3257_s2] ss:$12 sps:$4 sm:$0xff]   ;;  %v2211_v5 = vld [vmem:[%s3257_s2 + $0x1c] ss:$12 sps:$4 sm:$0xff]  }
   0x2   :  { %v2448_v2 = vld [vmem:[%s3258_s3 + $0x4] ss:$12 sps:$4 sm:$0xff]   ;;  %243 = vmatprep.subr.bf16.mxu1 %v2205_v0  ;;  %v2456_v4 = vld [vmem:[%s3258_s3] ss:$12 sps:$4 sm:$0xff]   ;;  %v2466_v6 = vld [vmem:[%s3258_s3 + $0x1c] ss:$12 sps:$4 sm:$0xff]  }
   0x3   :  { %589 = vmatprep.subr.bf16.mxu0 %v2448_v2  ;;  %244 = vmatpush1.bf16.msra.mxu1 %v2209_v3  ;;  %v2215_v7 = vld [vmem:[%s3257_s2 + $0x18] ss:$12 sps:$4 sm:$0xff]   ;;  %v2217_v9 = vld [vmem:[%s3257_s2 + $0x34] ss:$12 sps:$4 sm:$0xff]   ;;  %v2221_v11 = vld [vmem:[%s3257_s2 + $0x30] ss:$12 sps:$4 sm:$0xff]  }
   0x4   :  { %590 = vmatpush1.bf16.msra.mxu0 %v2456_v4  ;;  %245 = vmatprep.subr.bf16.mxu1 %v2211_v5  ;;  %v2474_v8 = vld [vmem:[%s3258_s3 + $0x18] ss:$12 sps:$4 sm:$0xff]   ;;  %v2483_v10 = vld [vmem:[%s3258_s3 + $0x34] ss:$12 sps:$4 sm:$0xff]   ;;  %v2491_v12 = vld [vmem:[%s3258_s3 + $0x30] ss:$12 sps:$4 sm:$0xff]  }
   0x5   :  { %591 = vmatprep.subr.bf16.mxu0 %v2466_v6  ;;  %v2223_v13 = vld [vmem:[%s3257_s2 + $0x4c] ss:$12 sps:$4 sm:$0xff]   ;;  %v2227_v15 = vld [vmem:[%s3257_s2 + $0x48] ss:$12 sps:$4 sm:$0xff]   ;;  %v2229_v17 = vld [vmem:[%s3257_s2 + $0x64] ss:$12 sps:$4 sm:$0xff]  }
   0x6   :  { %v2501_v14 = vld [vmem:[%s3258_s3 + $0x4c] ss:$12 sps:$4 sm:$0xff]   ;;  %v2510_v16 = vld [vmem:[%s3258_s3 + $0x48] ss:$12 sps:$4 sm:$0xff]   ;;  %v2519_v18 = vld [vmem:[%s3258_s3 + $0x64] ss:$12 sps:$4 sm:$0xff]  }
   0x7   :  { %246 = vmatpush1.bf16.msra.mxu1 %v2215_v7  ;;  %v2233_v19 = vld [vmem:[%s3257_s2 + $0x60] ss:$12 sps:$4 sm:$0xff]   ;;  %v2235_v21 = vld [vmem:[%s3257_s2 + $0x7c] ss:$12 sps:$4 sm:$0xff]   ;;  %v2239_v23 = vld [vmem:[%s3257_s2 + $0x78] ss:$12 sps:$4 sm:$0xff]  }
   0x8   :  { %592 = vmatpush1.bf16.msra.mxu0 %v2474_v8  ;;  %247 = vmatprep.subr.bf16.mxu1 %v2217_v9  ;;  %v2527_v20 = vld [vmem:[%s3258_s3 + $0x60] ss:$12 sps:$4 sm:$0xff]   ;;  %v2537_v22 = vld [vmem:[%s3258_s3 + $0x7c] ss:$12 sps:$4 sm:$0xff]   ;;  %v2546_v24 = vld [vmem:[%s3258_s3 + $0x78] ss:$12 sps:$4 sm:$0xff]  }
   0x9   :  { %593 = vmatprep.subr.bf16.mxu0 %v2483_v10  ;;  %v2241_v25 = vld [vmem:[%s3257_s2 + $0x94] ss:$12 sps:$4 sm:$0xff]   ;;  %v2245_v27 = vld [vmem:[%s3257_s2 + $0x90] ss:$12 sps:$4 sm:$0xff]   ;;  %v2247_v29 = vld [vmem:[%s3257_s2 + $0xac] ss:$12 sps:$4 sm:$0xff]  }
   0xa   :  { %v2555_v26 = vld [vmem:[%s3258_s3 + $0x94] ss:$12 sps:$4 sm:$0xff]   ;;  %v2563_v28 = vld [vmem:[%s3258_s3 + $0x90] ss:$12 sps:$4 sm:$0xff]   ;;  %v2573_v30 = vld [vmem:[%s3258_s3 + $0xac] ss:$12 sps:$4 sm:$0xff]  }
   0xb   :  { %248 = vmatpush1.bf16.msra.mxu1 %v2221_v11  ;;  %v2251_v31 = vld [vmem:[%s3257_s2 + $0xa8] ss:$12 sps:$4 sm:$0xff]   ;;  %v2587_v33 = vld [vmem:[%s3260_s1] sm:$0xff]  ;;  %v2258_v40 = vld [vmem:[%s3257_s2 + $0x50] ss:$12 sps:$4 sm:$0xff]   ;;  %v2731_v57 = vshrl.u32 %v76_v56, 7 }
   0xc   :  { %594 = vmatpush1.bf16.msra.mxu0 %v2491_v12  ;;  %249 = vmatprep.subr.bf16.mxu1 %v2223_v13  ;;  %v2581_v32 = vld [vmem:[%s3258_s3 + $0xa8] ss:$12 sps:$4 sm:$0xff]   ;;  %v2253_v35 = vld [vmem:[%s3259_s0] sm:$0xff]   ;;  %v2598_v36 = vpack.c.bf16 %v2587_v33, %v2587_v33  ;;  %v2262_v45 = vld [vmem:[%s3259_s0 + $0x18] sm:$0xff]  }
   0xd   :  { %595 = vmatprep.subr.bf16.mxu0 %v2501_v14  ;;  %v2254_v34 = vld [vmem:[%s3257_s2 + $0x8] ss:$12 sps:$4 sm:$0xff]   ;;  %v2255_v37 = vld [vmem:[%s3257_s2 + $0x20] ss:$12 sps:$4 sm:$0xff]   ;;  %v2257_v38 = vld [vmem:[%s3257_s2 + $0x38] ss:$12 sps:$4 sm:$0xff]  }
   0xe   :  { %v2256_v39 = vld [vmem:[%s3259_s0 + $0x8] sm:$0xff]   ;;  %v2259_v42 = vld [vmem:[%s3259_s0 + $0x10] sm:$0xff]   ;;  %v2263_v44 = vld [vmem:[%s3257_s2 + $0x98] ss:$12 sps:$4 sm:$0xff]   ;;  %3275 = vst [vmem:[#allocation5_spill] sm:$0xff] %v2731_v57  ;;  %v78_v58 = vsub.s32 0, %v2731_v57 }
   0xf   :  { %250 = vmatpush1.bf16.msra.mxu1 %v2227_v15  ;;  %v2260_v41 = vld [vmem:[%s3257_s2 + $0x68] ss:$12 sps:$4 sm:$0xff]   ;;  %v2261_v43 = vld [vmem:[%s3257_s2 + $0x80] ss:$12 sps:$4 sm:$0xff]   ;;  %v2264_v46 = vld [vmem:[%s3257_s2 + $0xb0] ss:$12 sps:$4 sm:$0xff]  }
  0x10   :  { %596 = vmatpush1.bf16.msra.mxu0 %v2510_v16  ;;  %251 = vmatprep.subr.bf16.mxu1 %v2229_v17  ;;  %v2654_v47 = vld [vmem:[%s3258_s3 + $0x8] ss:$12 sps:$4 sm:$0xff]   ;;  %v2663_v49 = vld [vmem:[%s3258_s3 + $0x20] ss:$12 sps:$4 sm:$0xff]   ;;  %v2670_v50 = vld [vmem:[%s3258_s3 + $0x38] ss:$12 sps:$4 sm:$0xff]  }
  0x11   :  { %597 = vmatprep.subr.bf16.mxu0 %v2519_v18  ;;  %v2677_v51 = vld [vmem:[%s3258_s3 + $0x50] ss:$12 sps:$4 sm:$0xff]   ;;  %v2686_v52 = vld [vmem:[%s3258_s3 + $0x68] ss:$12 sps:$4 sm:$0xff]   ;;  %v2693_v53 = vld [vmem:[%s3258_s3 + $0x80] ss:$12 sps:$4 sm:$0xff]  }
  0x12   :  { %v2700_v54 = vld [vmem:[%s3258_s3 + $0x98] ss:$12 sps:$4 sm:$0xff]   ;;  %v2707_v55 = vld [vmem:[%s3258_s3 + $0xb0] ss:$12 sps:$4 sm:$0xff]   ;;  %v74_v59 = vld [vmem:[%s3261_s4] sm:$0x7] }
  0x13   :  { %252 = vmatpush1.bf16.msra.mxu1 %v2233_v19  ;;  %v2740_v60 = vld [vmem:[%s3262_s5] sm:$0x7]  ;;  %v82_v61 = vsub.s32 1, %v2731_v57  ;;  %v79_v62 = vrot.slane %v74_v59, %v78_v58 }
  0x14   :  { %598 = vmatpush1.bf16.msra.mxu0 %v2527_v20  ;;  %253 = vmatprep.subr.bf16.mxu1 %v2235_v21  ;;  %v2744_v63 = vrot.slane %v2740_v60, %v78_v58 }
  0x15   :  { %599 = vmatprep.subr.bf16.mxu0 %v2537_v22  ;;  %v83_v0 = vrot.slane %v74_v59, %v82_v61  ;;  %v2747_v3 = vrot.slane %v2740_v60, %v82_v61 }
  0x17   :  { %254 = vmatpush1.bf16.msra.mxu1 %v2239_v23 }
  0x18   :  { %600 = vmatpush1.bf16.msra.mxu0 %v2546_v24  ;;  %255 = vmatprep.subr.bf16.mxu1 %v2241_v25 }
  0x19   :  { %601 = vmatprep.subr.bf16.mxu0 %v2555_v26 }
  0x1b   :  { %256 = vmatpush1.bf16.msra.mxu1 %v2245_v27 }
  0x1c   :  { %602 = vmatpush1.bf16.msra.mxu0 %v2563_v28  ;;  %257 = vmatprep.subr.bf16.mxu1 %v2247_v29 }
  0x1d   :  { %603 = vmatprep.subr.bf16.mxu0 %v2573_v30 }
  0x1f   :  { %258 = vmatpush1.bf16.msra.mxu1 %v2251_v31 }
  0x20   :  { %604 = vmatpush1.bf16.msra.mxu0 %v2581_v32  ;;  %1994 = vmatprep.subr.bf16.mxu1 %v2254_v34 }
  0x21   :  { %698 = vmatprep.subr.bf16.mxu0 %v2448_v2 }
  0x22   :  { %276 = vmatmul.mubr.bf16.vlgmr.msra.gmra.mrb[0].mxu1 %v2253_v35 }
  0x23   :  { %622 = vmatmul.mubr.bf16.vlgmr.msra.gmra.mrb[0].mxu0 %v2598_v36  ;;  %1995 = vmatpush3.bf16.msra.mxu1 %v2254_v34 }
  0x24   :  { %285 = vmatprep.mubr.bf16.mxu1 %v3269_v1  ;;  %1996 = vmatprep.subr.bf16.mxu1 %v2255_v37 }
  0x25   :  { %699 = vmatpush1.bf16.msra.mxu0 %v2456_v4  ;;  %730 = vmatprep.mubr.bf16.mxu0 %v3269_v1 }
  0x26   :  { %700 = vmatprep.subr.bf16.mxu0 %v2466_v6 }
  0x27   :  { %1997 = vmatpush3.bf16.msra.mxu1 %v2255_v37 }
  0x28   :  { %1998 = vmatprep.subr.bf16.mxu1 %v2257_v38 }
  0x29   :  { %701 = vmatpush1.bf16.msra.mxu0 %v2474_v8 }
  0x2a   :  { %702 = vmatprep.subr.bf16.mxu0 %v2483_v10  ;;  %286 = vmatmul.mubr.bf16.gmra.mrb[4].mxu1 %v2256_v39 }
  0x2b   :  { %1999 = vmatpush3.bf16.msra.mxu1 %v2257_v38  ;;  %295 = vmatprep.mubr.bf16.mxu1 %v3269_v1 }
  0x2c   :  { %2000 = vmatprep.subr.bf16.mxu1 %v2258_v40 }
  0x2d   :  { %703 = vmatpush1.bf16.msra.mxu0 %v2491_v12 }
  0x2e   :  { %704 = vmatprep.subr.bf16.mxu0 %v2501_v14 }
  0x2f   :  { %2001 = vmatpush3.bf16.msra.mxu1 %v2258_v40 }
  0x30   :  { %2002 = vmatprep.subr.bf16.mxu1 %v2260_v41 }
  0x31   :  { %705 = vmatpush1.bf16.msra.mxu0 %v2510_v16 }
  0x32   :  { %706 = vmatprep.subr.bf16.mxu0 %v2519_v18  ;;  %296 = vmatmul.mubr.bf16.gmra.mrb[8].mxu1 %v2259_v42 }
  0x33   :  { %2003 = vmatpush3.bf16.msra.mxu1 %v2260_v41  ;;  %305 = vmatprep.mubr.bf16.mxu1 %v3269_v1 }
  0x34   :  { %2004 = vmatprep.subr.bf16.mxu1 %v2261_v43 }
  0x35   :  { %707 = vmatpush1.bf16.msra.mxu0 %v2527_v20 }
  0x36   :  { %708 = vmatprep.subr.bf16.mxu0 %v2537_v22 }
  0x37   :  { %2005 = vmatpush3.bf16.msra.mxu1 %v2261_v43 }
  0x38   :  { %2006 = vmatprep.subr.bf16.mxu1 %v2263_v44 }
  0x39   :  { %709 = vmatpush1.bf16.msra.mxu0 %v2546_v24 }
  0x3a   :  { %710 = vmatprep.subr.bf16.mxu0 %v2555_v26  ;;  %306 = vmatmul.mubr.bf16.gmra.mrb[12].mxu1 %v2262_v45 }
  0x3b   :  { %2007 = vmatpush3.bf16.msra.mxu1 %v2263_v44  ;;  %2010 = vmatprep.mubr.bf16.mxu1 %v2253_v35 }
  0x3c   :  { %2008 = vmatprep.subr.bf16.mxu1 %v2264_v46 }
  0x3d   :  { %711 = vmatpush1.bf16.msra.mxu0 %v2563_v28 }
  0x3e   :  { %712 = vmatprep.subr.bf16.mxu0 %v2573_v30 }
  0x3f   :  { %2009 = vmatpush3.bf16.msra.mxu1 %v2264_v46 }
  0x40   :  { %2018 = vmatprep.subr.bf16.mxu1 %v3271_v48 }
  0x41   :  { %713 = vmatpush1.bf16.msra.mxu0 %v2581_v32 }
  0x42   :  { %807 = vmatprep.subr.bf16.mxu0 %v2448_v2  ;;  %2011 = vmatmul.mubr.bf16.vlgmr.msra.gmra.mrb[16].mxu1 %v2256_v39 }
  0x43   :  { %2019 = vmatpush3.bf16.msra.mxu1 %v2654_v47  ;;  %2014 = vmatprep.mubr.bf16.mxu1 %v2259_v42 }
  0x44   :  { %2020 = vmatprep.subr.bf16.mxu1 %v3271_v48 }
  0x47   :  { %2021 = vmatpush3.bf16.msra.mxu1 %v2663_v49 }
  0x48   :  { %2022 = vmatprep.subr.bf16.mxu1 %v3271_v48 }
  0x4a   :  { %2015 = vmatmul.mubr.bf16.gmra.mrb[20].mxu1 %v2262_v45 }
  0x4b   :  { %2023 = vmatpush3.bf16.msra.mxu1 %v2670_v50  ;;  %2034 = vmatprep.mubr.msk.bf16.mxu1 %vm2379_vm0, %v3271_v48 }
  0x4c   :  { %2024 = vmatprep.subr.bf16.mxu1 %v3271_v48 }
  0x4f   :  { %2025 = vmatpush3.bf16.msra.mxu1 %v2677_v51 }
  0x50   :  { %2026 = vmatprep.subr.bf16.mxu1 %v3271_v48 }
  0x53   :  { %2027 = vmatpush3.bf16.msra.mxu1 %v2686_v52 }
  0x54   :  { %2028 = vmatprep.subr.bf16.mxu1 %v3271_v48 }
  0x57   :  { %2029 = vmatpush3.bf16.msra.mxu1 %v2693_v53 }
  0x58   :  { %2030 = vmatprep.subr.bf16.mxu1 %v3271_v48 }
  0x5b   :  { %2031 = vmatpush3.bf16.msra.mxu1 %v2700_v54 }
  0x5c   :  { %2032 = vmatprep.subr.bf16.mxu1 %v3271_v48 }
  0x5f   :  { %2033 = vmatpush3.bf16.msra.mxu1 %v2707_v55 }
  0x60   :  { %2038 = vmatprep.subr.bf16.mxu1 %v3271_v48 }
  0x62   :  { %2035 = vmatmul.mubr.bf16.vlgmr.msra.gmra.mrb[24].mxu1 %v2598_v36 }
  0x63   :  { %2039 = vmatpush3.bf16.msra.mxu1 %v2654_v47  ;;  %2054 = vmatprep.mubr.msk.bf16.mxu1 %vm2379_vm0, %v3271_v48 }
  0x64   :  { %2040 = vmatprep.subr.bf16.mxu1 %v3271_v48 }
  0x67   :  { %2041 = vmatpush3.bf16.msra.mxu1 %v2663_v49 }
  0x68   :  { %2042 = vmatprep.subr.bf16.mxu1 %v3271_v48 }
  0x6b   :  { %2043 = vmatpush3.bf16.msra.mxu1 %v2670_v50 }
  0x6c   :  { %2044 = vmatprep.subr.bf16.mxu1 %v3271_v48 }
  0x6f   :  { %2045 = vmatpush3.bf16.msra.mxu1 %v2677_v51 }
  0x70   :  { %2046 = vmatprep.subr.bf16.mxu1 %v3271_v48 }
  0x73   :  { %2047 = vmatpush3.bf16.msra.mxu1 %v2686_v52 }
  0x74   :  { %2048 = vmatprep.subr.bf16.mxu1 %v3271_v48 }
  0x77   :  { %2049 = vmatpush3.bf16.msra.mxu1 %v2693_v53 }
  0x78   :  { %2050 = vmatprep.subr.bf16.mxu1 %v3271_v48 }
  0x7b   :  { %2051 = vmatpush3.bf16.msra.mxu1 %v2700_v54 }
  0x7c   :  { %2052 = vmatprep.subr.bf16.mxu1 %v3271_v48 }
  0x7f   :  { %2053 = vmatpush3.bf16.msra.mxu1 %v2707_v55 }
  0x80   :  { %2058 = vmatprep.subr.bf16.mxu1 %v3271_v48 }
  0xf5   :  { %v277_v5 = vpop.f32.mrb[0].mxu1 }
  0xf6   :  { %v623_v7 = vpop.f32.mrb[0].mxu0  ;;  %v278_v9 = vadd.f32 %v277_v5, %v79_v62  ;;  %v279_v13 = vpop.f32.mrb[1].mxu1 }
  0xf7   :  { %v624_v11 = vadd.f32 %v623_v7, %v2744_v63  ;;  %v625_v15 = vpop.f32.mrb[1].mxu0  ;;  %v280_v17 = vadd.f32 %v279_v13, %v83_v0  ;;  %v281_v21 = vpop.f32.mrb[2].mxu1 }
  0xf8   :  { %v626_v19 = vadd.f32 %v625_v15, %v2747_v3  ;;  %v627_v23 = vpop.f32.mrb[2].mxu0  ;;  %v2751_v27 = vadd.f32 %v281_v21, %v79_v62  ;;  %v283_v29 = vpop.f32.mrb[3].mxu1  ;;  %v86_v15 = vsub.s32 2, %v2731_v57 }
  0xf9   :  { %v670_v25 = vadd.f32 %v624_v11, %v278_v9  ;;  %v628_v31 = vpop.f32.mrb[3].mxu0  ;;  %v2753_v35 = vadd.f32 %v283_v29, %v83_v0 }
  0xfa   :  { %v677_v34 = vadd.f32 %v626_v19, %v280_v17  ;;  %v87_v31 = vrot.slane %v74_v59, %v86_v15 }
  0xfc   :  { %v1866_v1 = vmul.f32 -1.442695, %v677_v34 }
  0xfd   :  { %v287_v36 = vpop.f32.mrb[4].mxu1 }
  0xfe   :  { %v2755_v37 = vadd.f32 %v287_v36, %v79_v62  ;;  %v289_v38 = vpop.f32.mrb[5].mxu1 }
  0xff   :  { %v2757_v39 = vadd.f32 %v289_v38, %v83_v0  ;;  %v291_v40 = vpop.f32.mrb[6].mxu1 }
 0x100   :  { %v2759_v41 = vadd.f32 %v291_v40, %v79_v62  ;;  %v293_v42 = vpop.f32.mrb[7].mxu1 }
 0x101   :  { %v2761_v43 = vadd.f32 %v293_v42, %v83_v0 }
 0x105   :  { %v297_v44 = vpop.f32.mrb[8].mxu1 }
 0x106   :  { %v2763_v45 = vadd.f32 %v297_v44, %v79_v62  ;;  %v299_v46 = vpop.f32.mrb[9].mxu1  ;;  %v1865_v44 = vmul.f32 -1.442695, %v670_v25 }
 0x107   :  { %v2765_v56 = vadd.f32 %v299_v46, %v83_v0  ;;  %v301_v58 = vpop.f32.mrb[10].mxu1 }
 0x108   :  { %v2767_v61 = vadd.f32 %v301_v58, %v79_v62  ;;  %v303_v5 = vpop.f32.mrb[11].mxu1  ;;  %2281 = vpow2.f32 %v1865_v44  ;;  %v2795_v44 = vrot.slane %v2740_v60, %v86_v15 }
 0x109   :  { %v2769_v7 = vadd.f32 %v303_v5, %v83_v0  ;;  %2283 = vpow2.f32 %v1866_v1 }
 0x10d   :  { %v307_v9 = vpop.f32.mrb[12].mxu1 }
 0x10e   :  { %v2771_v11 = vadd.f32 %v307_v9, %v79_v62  ;;  %v309_v13 = vpop.f32.mrb[13].mxu1 }
 0x10f   :  { %v2774_v17 = vadd.f32 %v309_v13, %v83_v0  ;;  %v311_v19 = vpop.f32.mrb[14].mxu1 }
 0x110   :  { %v2776_v21 = vadd.f32 %v311_v19, %v79_v62  ;;  %v313_v23 = vpop.f32.mrb[15].mxu1 }
 0x111   :  { %v2778_v29 = vadd.f32 %v313_v23, %v83_v0 }
 0x112   :  { %3276 = vst [vmem:[#allocation6_spill] sm:$0xff] %v2776_v21  ;;  %v2282_v25 = vpop.eup %2281 }
 0x113   :  { %3277 = vst [vmem:[#allocation7_spill] sm:$0xff] %v2778_v29 }
 0x115   :  { %v2012_v36 = vpop.f32.mrb[16].mxu1 }
 0x116   :  { %v2780_v38 = vadd.f32 %v2012_v36, %v87_v31  ;;  %v350_v40 = vpop.f32.mrb[17].mxu1 }
 0x117   :  { %v2013_v42 = vpop.f32.mrb[18].mxu1 }
 0x118   :  { %v2782_v46 = vadd.f32 %v2013_v42, %v87_v31  ;;  %v353_v58 = vpop.f32.mrb[19].mxu1  ;;  %v674_v42 = vadd.f32 1.0, %v2282_v25 }
 0x119   :  { %v2784_v5 = vadd.f32 %v353_v58, %v87_v31  ;;  %v2284_v58 = vpop.eup %2283 }
 0x11a   :  { %2285 = vrcp.f32 %v674_v42 }
 0x11d   :  { %v2016_v9 = vpop.f32.mrb[20].mxu1 }
 0x11e   :  { %v2786_v13 = vadd.f32 %v2016_v9, %v87_v31  ;;  %v366_v62 = vpop.f32.mrb[21].mxu1  ;;  %v681_v9 = vadd.f32 1.0, %v2284_v58 }
 0x11f   :  { %v2788_v19 = vadd.f32 %v366_v62, %v87_v31  ;;  %v2017_v0 = vpop.f32.mrb[22].mxu1 }
 0x120   :  { %3278 = vst [vmem:[#allocation8_spill] sm:$0xff] %v2786_v13  ;;  %v2790_v59 = vadd.f32 %v2017_v0, %v87_v31  ;;  %v369_v23 = vpop.f32.mrb[23].mxu1  ;;  %2287 = vrcp.f32 %v681_v9 }
 0x121   :  { %v2792_v36 = vadd.f32 %v369_v23, %v87_v31 }
 0x122   :  { %3279 = vst [vmem:[#allocation9_spill] sm:$0xff] %v2790_v59  ;;  %v351_v59 = vadd.f32 %v350_v40, %v87_v31 }
 0x124   :  { %v2286_v29 = vpop.eup %2285 }
 0x12a   :  { %v2288_v1 = vpop.eup %2287 }
 0x12b   :  { %v687_v25 = vsub.f32 1.0, %v2288_v1  ;;  %v689_v60 = vmul.f32 %v2288_v1, %v2587_v33 }
 0x135   :  { %v664_v48 = vpop.f32.mrb[24].mxu1 }
 0x136   :  { %v665_v62 = vadd.f32 %v664_v48, %v2795_v44  ;;  %v2036_v57 = vpop.f32.mrb[25].mxu1 }
 0x137   :  { %v667_v0 = vpop.f32.mrb[26].mxu1  ;;  %v3280_v57 = vmov 0.0  }
 0x138   :  { %v684_v23 = vmul.f32 %v2286_v29, %v665_v62  ;;  %v2037_v21 = vpop.f32.mrb[27].mxu1 }
 0x139   :  { %v3281_v21 = vmov 0  }
 0x13a   :  { %v685_v34 = vadd.f32 %v684_v23, %v351_v59 }
 0x13c   :  { %2289 = vtanh.f32 %v685_v34 }
 0x146   :  { %v2290_v42 = vpop.eup %2289 }
 0x147   :  { %v688_v13 = vmul.f32 %v2290_v42, %v687_v25 }
 0x149   :  { %v2799_v15 = vadd.f32 %v689_v60, %v688_v13 }
 0x14b   :  { %v697_v48 = vpack.c.bf16 %v2799_v15, %v2799_v15 }
 0x14d   :  { %731 = vmatmul.mubr.bf16.vlgmr.msra.gmra.mrb[4].mxu0 %v697_v48  ;;  %2055 = vmatmul.mubr.bf16.vlgmr.msra.gmra.mrb[28].mxu1 %v697_v48 }
 0x14e   :  { %808 = vmatpush1.bf16.msra.mxu0 %v2456_v4  ;;  %2059 = vmatpush3.bf16.msra.mxu1 %v2654_v47 }
 0x14f   :  { %809 = vmatprep.subr.bf16.mxu0 %v2466_v6  ;;  %2060 = vmatprep.subr.bf16.mxu1 %v3280_v57 }
 0x150   :  { %839 = vmatprep.mubr.bf16.mxu0 %v3281_v21  ;;  %2074 = vmatprep.mubr.msk.bf16.mxu1 %vm2379_vm0, %v3280_v57 }
 0x152   :  { %810 = vmatpush1.bf16.msra.mxu0 %v2474_v8  ;;  %2061 = vmatpush3.bf16.msra.mxu1 %v2663_v49 }
 0x153   :  { %811 = vmatprep.subr.bf16.mxu0 %v2483_v10  ;;  %2062 = vmatprep.subr.bf16.mxu1 %v3280_v57 }
 0x156   :  { %812 = vmatpush1.bf16.msra.mxu0 %v2491_v12  ;;  %2063 = vmatpush3.bf16.msra.mxu1 %v2670_v50 }
 0x157   :  { %813 = vmatprep.subr.bf16.mxu0 %v2501_v14  ;;  %2064 = vmatprep.subr.bf16.mxu1 %v3280_v57 }
 0x15a   :  { %814 = vmatpush1.bf16.msra.mxu0 %v2510_v16  ;;  %2065 = vmatpush3.bf16.msra.mxu1 %v2677_v51 }
 0x15b   :  { %815 = vmatprep.subr.bf16.mxu0 %v2519_v18  ;;  %2066 = vmatprep.subr.bf16.mxu1 %v3280_v57 }
 0x15e   :  { %816 = vmatpush1.bf16.msra.mxu0 %v2527_v20  ;;  %2067 = vmatpush3.bf16.msra.mxu1 %v2686_v52 }
 0x15f   :  { %817 = vmatprep.subr.bf16.mxu0 %v2537_v22  ;;  %2068 = vmatprep.subr.bf16.mxu1 %v3280_v57 }
 0x162   :  { %818 = vmatpush1.bf16.msra.mxu0 %v2546_v24  ;;  %2069 = vmatpush3.bf16.msra.mxu1 %v2693_v53 }
 0x163   :  { %819 = vmatprep.subr.bf16.mxu0 %v2555_v26  ;;  %2070 = vmatprep.subr.bf16.mxu1 %v3280_v57 }
 0x166   :  { %820 = vmatpush1.bf16.msra.mxu0 %v2563_v28  ;;  %2071 = vmatpush3.bf16.msra.mxu1 %v2700_v54 }
 0x167   :  { %821 = vmatprep.subr.bf16.mxu0 %v2573_v30  ;;  %2072 = vmatprep.subr.bf16.mxu1 %v3280_v57 }
 0x16a   :  { %822 = vmatpush1.bf16.msra.mxu0 %v2581_v32  ;;  %2073 = vmatpush3.bf16.msra.mxu1 %v2707_v55 }
 0x16b   :  { %916 = vmatprep.subr.bf16.mxu0 %v2448_v2  ;;  %2078 = vmatprep.subr.bf16.mxu1 %v3280_v57 }
 0x220   :  { %v732_v33 = vpop.f32.mrb[4].mxu0  ;;  %v773_v29 = vpop.f32.mrb[28].mxu1 }
 0x221   :  { %v733_v31 = vadd.f32 %v732_v33, %v2744_v63  ;;  %v734_v40 = vpop.f32.mrb[5].mxu0  ;;  %v2056_v13 = vpop.f32.mrb[29].mxu1 }
 0x222   :  { %v735_v59 = vadd.f32 %v734_v40, %v2747_v3  ;;  %v736_v58 = vpop.f32.mrb[6].mxu0  ;;  %v776_v9 = vpop.f32.mrb[30].mxu1  ;;  %v774_v13 = vadd.f32 %v773_v29, %v2795_v44 }
 0x223   :  { %v779_v62 = vadd.f32 %v733_v31, %v2751_v27  ;;  %v737_v0 = vpop.f32.mrb[7].mxu0  ;;  %v2057_v23 = vpop.f32.mrb[31].mxu1 }
 0x224   :  { %v786_v34 = vadd.f32 %v735_v59, %v2753_v35 }
 0x225   :  { %v1867_v1 = vmul.f32 -1.442695, %v779_v62 }
 0x226   :  { %v1868_v25 = vmul.f32 -1.442695, %v786_v34 }
 0x227   :  { %2291 = vpow2.f32 %v1867_v1 }
 0x228   :  { %2293 = vpow2.f32 %v1868_v25 }
 0x231   :  { %v2292_v42 = vpop.eup %2291 }
 0x232   :  { %v783_v60 = vadd.f32 1.0, %v2292_v42  ;;  %v2294_v48 = vpop.eup %2293 }
 0x233   :  { %v790_v33 = vadd.f32 1.0, %v2294_v48 }
 0x234   :  { %2295 = vrcp.f32 %v783_v60 }
 0x235   :  { %2297 = vrcp.f32 %v790_v33 }
 0x23e   :  { %v2296_v40 = vpop.eup %2295 }
 0x23f   :  { %v793_v58 = vmul.f32 %v2296_v40, %v774_v13  ;;  %v2298_v31 = vpop.eup %2297 }
 0x240   :  { %v796_v9 = vsub.f32 1.0, %v2298_v31  ;;  %v798_v62 = vmul.f32 %v2298_v31, %v2799_v15 }
 0x241   :  { %v794_v27 = vadd.f32 %v793_v58, %v2784_v5 }
 0x243   :  { %2299 = vtanh.f32 %v794_v27 }
 0x24d   :  { %v2300_v35 = vpop.eup %2299 }
 0x24e   :  { %v797_v59 = vmul.f32 %v2300_v35, %v796_v9 }
 0x250   :  { %v2845_v0 = vadd.f32 %v798_v62, %v797_v59 }
 0x252   :  { %v806_v23 = vpack.c.bf16 %v2845_v0, %v2845_v0 }
 0x254   :  { %840 = vmatmul.mubr.bf16.vlgmr.msra.gmra.mrb[8].mxu0 %v806_v23  ;;  %2075 = vmatmul.mubr.bf16.vlgmr.msra.gmra.mrb[32].mxu1 %v806_v23 }
 0x255   :  { %917 = vmatpush1.bf16.msra.mxu0 %v2456_v4  ;;  %2079 = vmatpush3.bf16.msra.mxu1 %v2654_v47 }
 0x256   :  { %918 = vmatprep.subr.bf16.mxu0 %v2466_v6  ;;  %2080 = vmatprep.subr.bf16.mxu1 %v3280_v57 }
 0x257   :  { %948 = vmatprep.mubr.bf16.mxu0 %v3281_v21  ;;  %2094 = vmatprep.mubr.msk.bf16.mxu1 %vm2379_vm0, %v3280_v57 }
 0x259   :  { %919 = vmatpush1.bf16.msra.mxu0 %v2474_v8  ;;  %2081 = vmatpush3.bf16.msra.mxu1 %v2663_v49 }
 0x25a   :  { %920 = vmatprep.subr.bf16.mxu0 %v2483_v10  ;;  %2082 = vmatprep.subr.bf16.mxu1 %v3280_v57 }
 0x25d   :  { %921 = vmatpush1.bf16.msra.mxu0 %v2491_v12  ;;  %2083 = vmatpush3.bf16.msra.mxu1 %v2670_v50 }
 0x25e   :  { %922 = vmatprep.subr.bf16.mxu0 %v2501_v14  ;;  %2084 = vmatprep.subr.bf16.mxu1 %v3280_v57 }
 0x261   :  { %923 = vmatpush1.bf16.msra.mxu0 %v2510_v16  ;;  %2085 = vmatpush3.bf16.msra.mxu1 %v2677_v51 }
 0x262   :  { %924 = vmatprep.subr.bf16.mxu0 %v2519_v18  ;;  %2086 = vmatprep.subr.bf16.mxu1 %v3280_v57 }
 0x265   :  { %925 = vmatpush1.bf16.msra.mxu0 %v2527_v20  ;;  %2087 = vmatpush3.bf16.msra.mxu1 %v2686_v52 }
 0x266   :  { %926 = vmatprep.subr.bf16.mxu0 %v2537_v22  ;;  %2088 = vmatprep.subr.bf16.mxu1 %v3280_v57 }
 0x269   :  { %927 = vmatpush1.bf16.msra.mxu0 %v2546_v24  ;;  %2089 = vmatpush3.bf16.msra.mxu1 %v2693_v53 }
 0x26a   :  { %928 = vmatprep.subr.bf16.mxu0 %v2555_v26  ;;  %2090 = vmatprep.subr.bf16.mxu1 %v3280_v57 }
 0x26d   :  { %929 = vmatpush1.bf16.msra.mxu0 %v2563_v28  ;;  %2091 = vmatpush3.bf16.msra.mxu1 %v2700_v54 }
 0x26e   :  { %930 = vmatprep.subr.bf16.mxu0 %v2573_v30  ;;  %2092 = vmatprep.subr.bf16.mxu1 %v3280_v57 }
 0x271   :  { %931 = vmatpush1.bf16.msra.mxu0 %v2581_v32  ;;  %2093 = vmatpush3.bf16.msra.mxu1 %v2707_v55 }
 0x272   :  { %1025 = vmatprep.subr.bf16.mxu0 %v2448_v2  ;;  %2098 = vmatprep.subr.bf16.mxu1 %v3280_v57 }
 0x327   :  { %v841_v5 = vpop.f32.mrb[8].mxu0  ;;  %v882_v29 = vpop.f32.mrb[32].mxu1 }
 0x328   :  { %v842_v34 = vadd.f32 %v841_v5, %v2744_v63  ;;  %v843_v1 = vpop.f32.mrb[9].mxu0  ;;  %v2076_v25 = vpop.f32.mrb[33].mxu1  ;;  %v883_v23 = vadd.f32 %v882_v29, %v2795_v44 }
 0x329   :  { %v844_v42 = vadd.f32 %v843_v1, %v2747_v3  ;;  %v845_v60 = vpop.f32.mrb[10].mxu0  ;;  %v885_v48 = vpop.f32.mrb[34].mxu1 }
 0x32a   :  { %v888_v33 = vadd.f32 %v842_v34, %v2755_v37  ;;  %v846_v13 = vpop.f32.mrb[11].mxu0  ;;  %v2077_v40 = vpop.f32.mrb[35].mxu1 }
 0x32b   :  { %v895_v58 = vadd.f32 %v844_v42, %v2757_v39 }
 0x32c   :  { %v1869_v27 = vmul.f32 -1.442695, %v888_v33 }
 0x32d   :  { %v1870_v31 = vmul.f32 -1.442695, %v895_v58 }
 0x32e   :  { %2301 = vpow2.f32 %v1869_v27 }
 0x32f   :  { %2303 = vpow2.f32 %v1870_v31 }
 0x338   :  { %v2302_v9 = vpop.eup %2301 }
 0x339   :  { %v892_v35 = vadd.f32 1.0, %v2302_v9  ;;  %v2304_v59 = vpop.eup %2303 }
 0x33a   :  { %v899_v62 = vadd.f32 1.0, %v2304_v59 }
 0x33b   :  { %2305 = vrcp.f32 %v892_v35 }
 0x33c   :  { %2307 = vrcp.f32 %v899_v62 }
 0x345   :  { %v2306_v5 = vpop.eup %2305 }
 0x346   :  { %v902_v1 = vmul.f32 %v2306_v5, %v883_v23  ;;  %v2308_v34 = vpop.eup %2307 }
 0x347   :  { %v905_v25 = vsub.f32 1.0, %v2308_v34  ;;  %v907_v60 = vmul.f32 %v2308_v34, %v2845_v0 }
 0x348   :  { %v903_v37 = vadd.f32 %v902_v1, %v2780_v38 }
 0x34a   :  { %2309 = vtanh.f32 %v903_v37 }
 0x354   :  { %v2310_v39 = vpop.eup %2309 }
 0x355   :  { %v906_v42 = vmul.f32 %v2310_v39, %v905_v25  ;;  %v2944_v39 = vld [vmem:[%s3258_s3] ss:$12 sps:$4 sm:$0xff]  }
 0x357   :  { %v2891_v48 = vadd.f32 %v907_v60, %v906_v42  ;;  %v2961_v42 = vld [vmem:[%s3258_s3 + $0x18] ss:$12 sps:$4 sm:$0xff]   ;;  %v2968_v60 = vld [vmem:[%s3258_s3 + $0x34] ss:$12 sps:$4 sm:$0xff]  }
 0x359   :  { %v915_v33 = vpack.c.bf16 %v2891_v48, %v2891_v48 }
 0x35b   :  { %949 = vmatmul.mubr.bf16.vlgmr.msra.gmra.mrb[12].mxu0 %v915_v33  ;;  %2095 = vmatmul.mubr.bf16.vlgmr.msra.gmra.mrb[36].mxu1 %v915_v33  ;;  %v2975_v33 = vld [vmem:[%s3258_s3 + $0x30] ss:$12 sps:$4 sm:$0xff]  }
 0x35c   :  { %1026 = vmatpush1.bf16.msra.mxu0 %v2456_v4  ;;  %2099 = vmatpush3.bf16.msra.mxu1 %v2654_v47 }
 0x35d   :  { %1027 = vmatprep.subr.bf16.mxu0 %v2466_v6  ;;  %2100 = vmatprep.subr.bf16.mxu1 %v3280_v57 }
 0x35e   :  { %1057 = vmatprep.mubr.bf16.mxu0 %v3281_v21  ;;  %2114 = vmatprep.mubr.msk.bf16.mxu1 %vm2379_vm0, %v3280_v57 }
 0x360   :  { %1028 = vmatpush1.bf16.msra.mxu0 %v2474_v8  ;;  %2101 = vmatpush3.bf16.msra.mxu1 %v2663_v49 }
 0x361   :  { %1029 = vmatprep.subr.bf16.mxu0 %v2483_v10  ;;  %2102 = vmatprep.subr.bf16.mxu1 %v3280_v57 }
 0x364   :  { %1030 = vmatpush1.bf16.msra.mxu0 %v2491_v12  ;;  %2103 = vmatpush3.bf16.msra.mxu1 %v2670_v50 }
 0x365   :  { %1031 = vmatprep.subr.bf16.mxu0 %v2501_v14  ;;  %2104 = vmatprep.subr.bf16.mxu1 %v3280_v57 }
 0x368   :  { %1032 = vmatpush1.bf16.msra.mxu0 %v2510_v16  ;;  %2105 = vmatpush3.bf16.msra.mxu1 %v2677_v51 }
 0x369   :  { %1033 = vmatprep.subr.bf16.mxu0 %v2519_v18  ;;  %2106 = vmatprep.subr.bf16.mxu1 %v3280_v57 }
 0x36c   :  { %1034 = vmatpush1.bf16.msra.mxu0 %v2527_v20  ;;  %2107 = vmatpush3.bf16.msra.mxu1 %v2686_v52 }
 0x36d   :  { %1035 = vmatprep.subr.bf16.mxu0 %v2537_v22  ;;  %2108 = vmatprep.subr.bf16.mxu1 %v3280_v57 }
 0x370   :  { %1036 = vmatpush1.bf16.msra.mxu0 %v2546_v24  ;;  %2109 = vmatpush3.bf16.msra.mxu1 %v2693_v53 }
 0x371   :  { %1037 = vmatprep.subr.bf16.mxu0 %v2555_v26  ;;  %2110 = vmatprep.subr.bf16.mxu1 %v3280_v57 }
 0x374   :  { %1038 = vmatpush1.bf16.msra.mxu0 %v2563_v28  ;;  %2111 = vmatpush3.bf16.msra.mxu1 %v2700_v54 }
 0x375   :  { %1039 = vmatprep.subr.bf16.mxu0 %v2573_v30  ;;  %2112 = vmatprep.subr.bf16.mxu1 %v3280_v57 }
 0x378   :  { %1040 = vmatpush1.bf16.msra.mxu0 %v2581_v32  ;;  %2113 = vmatpush3.bf16.msra.mxu1 %v2707_v55 }
 0x379   :  { %1134 = vmatprep.subr.bf16.mxu0 %v2448_v2  ;;  %2118 = vmatprep.subr.bf16.mxu1 %v3280_v57 }
 0x42e   :  { %v950_v4 = vpop.f32.mrb[12].mxu0  ;;  %v991_v6 = vpop.f32.mrb[36].mxu1 }
 0x42f   :  { %v951_v8 = vadd.f32 %v950_v4, %v2744_v63  ;;  %v952_v10 = vpop.f32.mrb[13].mxu0  ;;  %v2096_v12 = vpop.f32.mrb[37].mxu1  ;;  %v992_v35 = vadd.f32 %v991_v6, %v2795_v44  ;;  %v2982_v4 = vld [vmem:[%s3258_s3 + $0x4c] ss:$12 sps:$4 sm:$0xff]   ;;  %v2989_v6 = vld [vmem:[%s3258_s3 + $0x48] ss:$12 sps:$4 sm:$0xff]  }
 0x430   :  { %v953_v14 = vadd.f32 %v952_v10, %v2747_v3  ;;  %v954_v16 = vpop.f32.mrb[14].mxu0  ;;  %v994_v18 = vpop.f32.mrb[38].mxu1  ;;  %v3003_v10 = vld [vmem:[%s3258_s3 + $0x60] ss:$12 sps:$4 sm:$0xff]  }
 0x431   :  { %v997_v20 = vadd.f32 %v951_v8, %v2759_v41  ;;  %v955_v38 = vpop.f32.mrb[15].mxu0  ;;  %v2097_v29 = vpop.f32.mrb[39].mxu1  ;;  %v2996_v8 = vld [vmem:[%s3258_s3 + $0x64] ss:$12 sps:$4 sm:$0xff]  }
 0x432   :  { %v1004_v13 = vadd.f32 %v953_v14, %v2761_v43 }
 0x433   :  { %v1871_v40 = vmul.f32 -1.442695, %v997_v20 }
 0x434   :  { %v1872_v2 = vmul.f32 -1.442695, %v1004_v13 }
 0x435   :  { %2311 = vpow2.f32 %v1871_v40 }
 0x436   :  { %2313 = vpow2.f32 %v1872_v2 }
 0x43f   :  { %v2312_v58 = vpop.eup %2311 }
 0x440   :  { %v1001_v27 = vadd.f32 1.0, %v2312_v58  ;;  %v2314_v31 = vpop.eup %2313 }
 0x441   :  { %v1008_v9 = vadd.f32 1.0, %v2314_v31 }
 0x442   :  { %2315 = vrcp.f32 %v1001_v27 }
 0x443   :  { %2317 = vrcp.f32 %v1008_v9 }
 0x44c   :  { %v2316_v59 = vpop.eup %2315 }
 0x44d   :  { %v1011_v62 = vmul.f32 %v2316_v59, %v992_v35  ;;  %v2318_v23 = vpop.eup %2317 }
 0x44e   :  { %v1014_v5 = vsub.f32 1.0, %v2318_v23  ;;  %v1016_v37 = vmul.f32 %v2318_v23, %v2891_v48 }
 0x44f   :  { %v1012_v41 = vadd.f32 %v1011_v62, %v2782_v46  ;;  %v2951_v46 = vld [vmem:[%s3258_s3 + $0x1c] ss:$12 sps:$4 sm:$0xff]  }
 0x451   :  { %2319 = vtanh.f32 %v1012_v41 }
 0x45b   :  { %v2320_v43 = vpop.eup %2319 }
 0x45c   :  { %v1015_v1 = vmul.f32 %v2320_v43, %v1014_v5 }
 0x45e   :  { %v2937_v34 = vadd.f32 %v1016_v37, %v1015_v1  ;;  %v3068_v37 = vld [vmem:[%s3258_s3 + $0x78] ss:$12 sps:$4 sm:$0xff]  }
 0x460   :  { %v1024_v25 = vpack.c.bf16 %v2937_v34, %v2937_v34 }
 0x462   :  { %1058 = vmatmul.mubr.bf16.vlgmr.msra.gmra.mrb[16].mxu0 %v1024_v25  ;;  %2115 = vmatmul.mubr.bf16.vlgmr.msra.gmra.mrb[40].mxu1 %v1024_v25  ;;  %v3075_v25 = vld [vmem:[%s3258_s3 + $0x94] ss:$12 sps:$4 sm:$0xff]  }
 0x463   :  { %1135 = vmatpush1.bf16.msra.mxu0 %v2944_v39  ;;  %2119 = vmatpush3.bf16.msra.mxu1 %v2654_v47 }
 0x464   :  { %1136 = vmatprep.subr.bf16.mxu0 %v2951_v46  ;;  %2120 = vmatprep.subr.bf16.mxu1 %v3280_v57 }
 0x465   :  { %1166 = vmatprep.mubr.bf16.mxu0 %v3281_v21  ;;  %2134 = vmatprep.mubr.msk.bf16.mxu1 %vm2379_vm0, %v3280_v57 }
 0x467   :  { %1137 = vmatpush1.bf16.msra.mxu0 %v2961_v42  ;;  %2121 = vmatpush3.bf16.msra.mxu1 %v2663_v49 }
 0x468   :  { %1138 = vmatprep.subr.bf16.mxu0 %v2968_v60  ;;  %2122 = vmatprep.subr.bf16.mxu1 %v3280_v57 }
 0x46b   :  { %1139 = vmatpush1.bf16.msra.mxu0 %v2975_v33  ;;  %2123 = vmatpush3.bf16.msra.mxu1 %v2670_v50 }
 0x46c   :  { %1140 = vmatprep.subr.bf16.mxu0 %v2982_v4  ;;  %2124 = vmatprep.subr.bf16.mxu1 %v3280_v57 }
 0x46f   :  { %1141 = vmatpush1.bf16.msra.mxu0 %v2989_v6  ;;  %2125 = vmatpush3.bf16.msra.mxu1 %v2677_v51 }
 0x470   :  { %1142 = vmatprep.subr.bf16.mxu0 %v2996_v8  ;;  %2126 = vmatprep.subr.bf16.mxu1 %v3280_v57 }
 0x473   :  { %1143 = vmatpush1.bf16.msra.mxu0 %v3003_v10  ;;  %2127 = vmatpush3.bf16.msra.mxu1 %v2686_v52 }
 0x474   :  { %1144 = vmatprep.subr.bf16.mxu0 %v2537_v22  ;;  %2128 = vmatprep.subr.bf16.mxu1 %v3280_v57  ;;  %v3022_v22 = vld [vmem:[%s3258_s3 + $0x4] ss:$12 sps:$4 sm:$0xff]  }
 0x477   :  { %1145 = vmatpush1.bf16.msra.mxu0 %v2546_v24  ;;  %2129 = vmatpush3.bf16.msra.mxu1 %v2693_v53 }
 0x478   :  { %1146 = vmatprep.subr.bf16.mxu0 %v2555_v26  ;;  %2130 = vmatprep.subr.bf16.mxu1 %v3280_v57 }
 0x47b   :  { %1147 = vmatpush1.bf16.msra.mxu0 %v2563_v28  ;;  %2131 = vmatpush3.bf16.msra.mxu1 %v2700_v54 }
 0x47c   :  { %1148 = vmatprep.subr.bf16.mxu0 %v2573_v30  ;;  %2132 = vmatprep.subr.bf16.mxu1 %v3280_v57 }
 0x47f   :  { %1149 = vmatpush1.bf16.msra.mxu0 %v2581_v32  ;;  %2133 = vmatpush3.bf16.msra.mxu1 %v2707_v55 }
 0x480   :  { %1243 = vmatprep.subr.bf16.mxu0 %v3022_v22  ;;  %2138 = vmatprep.subr.bf16.mxu1 %v3280_v57 }
 0x535   :  { %v1059_v24 = vpop.f32.mrb[16].mxu0  ;;  %v1100_v26 = vpop.f32.mrb[40].mxu1 }
 0x536   :  { %v1060_v28 = vadd.f32 %v1059_v24, %v2744_v63  ;;  %v1061_v30 = vpop.f32.mrb[17].mxu0  ;;  %v2116_v12 = vpop.f32.mrb[41].mxu1  ;;  %v1101_v9 = vadd.f32 %v1100_v26, %v2795_v44  ;;  %v3082_v24 = vld [vmem:[%s3258_s3 + $0x90] ss:$12 sps:$4 sm:$0xff]   ;;  %v3089_v26 = vld [vmem:[%s3258_s3 + $0xac] ss:$12 sps:$4 sm:$0xff]  }
 0x537   :  { %v1062_v14 = vadd.f32 %v1061_v30, %v2747_v3  ;;  %v1063_v32 = vpop.f32.mrb[18].mxu0  ;;  %v1103_v16 = vpop.f32.mrb[42].mxu1 }
 0x538   :  { %v1106_v18 = vadd.f32 %v1060_v28, %v2763_v45  ;;  %v1064_v20 = vpop.f32.mrb[19].mxu0  ;;  %v2117_v38 = vpop.f32.mrb[43].mxu1  ;;  %v3096_v28 = vld [vmem:[%s3258_s3 + $0xa8] ss:$12 sps:$4 sm:$0xff]  }
 0x539   :  { %v1113_v29 = vadd.f32 %v1062_v14, %v2765_v56 }
 0x53a   :  { %v1873_v13 = vmul.f32 -1.442695, %v1106_v18 }
 0x53b   :  { %v1874_v40 = vmul.f32 -1.442695, %v1113_v29 }
 0x53c   :  { %2321 = vpow2.f32 %v1873_v13 }
 0x53d   :  { %2323 = vpow2.f32 %v1874_v40 }
 0x546   :  { %v2322_v2 = vpop.eup %2321 }
 0x547   :  { %v1110_v58 = vadd.f32 1.0, %v2322_v2  ;;  %v2324_v27 = vpop.eup %2323 }
 0x548   :  { %v1117_v31 = vadd.f32 1.0, %v2324_v27 }
 0x549   :  { %2325 = vrcp.f32 %v1110_v58 }
 0x54a   :  { %2327 = vrcp.f32 %v1117_v31 }
 0x553   :  { %v2326_v35 = vpop.eup %2325 }
 0x554   :  { %v1120_v59 = vmul.f32 %v2326_v35, %v1101_v9  ;;  %v2328_v62 = vpop.eup %2327 }
 0x555   :  { %v1123_v41 = vsub.f32 1.0, %v2328_v62  ;;  %v1125_v5 = vmul.f32 %v2328_v62, %v2937_v34 }
 0x556   :  { %v1121_v45 = vadd.f32 %v1120_v59, %v2788_v19  ;;  %v3061_v19 = vld [vmem:[%s3258_s3 + $0x7c] ss:$12 sps:$4 sm:$0xff]  }
 0x558   :  { %2329 = vtanh.f32 %v1121_v45 }
 0x562   :  { %v2330_v56 = vpop.eup %2329 }
 0x563   :  { %v1124_v23 = vmul.f32 %v2330_v56, %v1123_v41 }
 0x565   :  { %v3033_v43 = vadd.f32 %v1125_v5, %v1124_v23 }
 0x567   :  { %v1133_v1 = vpack.c.bf16 %v3033_v43, %v3033_v43 }
 0x569   :  { %1167 = vmatmul.mubr.bf16.vlgmr.msra.gmra.mrb[20].mxu0 %v1133_v1  ;;  %2135 = vmatmul.mubr.bf16.vlgmr.msra.gmra.mrb[44].mxu1 %v1133_v1 }
 0x56a   :  { %1244 = vmatpush1.bf16.msra.mxu0 %v2944_v39  ;;  %2139 = vmatpush3.bf16.msra.mxu1 %v2654_v47 }
 0x56b   :  { %1245 = vmatprep.subr.bf16.mxu0 %v2951_v46  ;;  %2140 = vmatprep.subr.bf16.mxu1 %v3280_v57 }
 0x56c   :  { %1275 = vmatprep.mubr.bf16.mxu0 %v3281_v21  ;;  %2154 = vmatprep.mubr.msk.bf16.mxu1 %vm2379_vm0, %v3280_v57 }
 0x56e   :  { %1246 = vmatpush1.bf16.msra.mxu0 %v2961_v42  ;;  %2141 = vmatpush3.bf16.msra.mxu1 %v2663_v49 }
 0x56f   :  { %1247 = vmatprep.subr.bf16.mxu0 %v2968_v60  ;;  %2142 = vmatprep.subr.bf16.mxu1 %v3280_v57 }
 0x572   :  { %1248 = vmatpush1.bf16.msra.mxu0 %v2975_v33  ;;  %2143 = vmatpush3.bf16.msra.mxu1 %v2670_v50 }
 0x573   :  { %1249 = vmatprep.subr.bf16.mxu0 %v2982_v4  ;;  %2144 = vmatprep.subr.bf16.mxu1 %v3280_v57 }
 0x576   :  { %1250 = vmatpush1.bf16.msra.mxu0 %v2989_v6  ;;  %2145 = vmatpush3.bf16.msra.mxu1 %v2677_v51 }
 0x577   :  { %1251 = vmatprep.subr.bf16.mxu0 %v2996_v8  ;;  %2146 = vmatprep.subr.bf16.mxu1 %v3280_v57 }
 0x57a   :  { %1252 = vmatpush1.bf16.msra.mxu0 %v3003_v10  ;;  %2147 = vmatpush3.bf16.msra.mxu1 %v2686_v52 }
 0x57b   :  { %1253 = vmatprep.subr.bf16.mxu0 %v3061_v19  ;;  %2148 = vmatprep.subr.bf16.mxu1 %v3280_v57 }
 0x57e   :  { %1254 = vmatpush1.bf16.msra.mxu0 %v3068_v37  ;;  %2149 = vmatpush3.bf16.msra.mxu1 %v2693_v53 }
 0x57f   :  { %1255 = vmatprep.subr.bf16.mxu0 %v3075_v25  ;;  %2150 = vmatprep.subr.bf16.mxu1 %v3280_v57 }
 0x582   :  { %1256 = vmatpush1.bf16.msra.mxu0 %v3082_v24  ;;  %2151 = vmatpush3.bf16.msra.mxu1 %v2700_v54 }
 0x583   :  { %1257 = vmatprep.subr.bf16.mxu0 %v3089_v26  ;;  %2152 = vmatprep.subr.bf16.mxu1 %v3280_v57 }
 0x586   :  { %1258 = vmatpush1.bf16.msra.mxu0 %v3096_v28  ;;  %2153 = vmatpush3.bf16.msra.mxu1 %v2707_v55 }
 0x587   :  { %1352 = vmatprep.subr.bf16.mxu0 %v3022_v22  ;;  %2158 = vmatprep.subr.bf16.mxu1 %v3280_v57 }
 0x63c   :  { %v1168_v30 = vpop.f32.mrb[20].mxu0  ;;  %v1209_v12 = vpop.f32.mrb[44].mxu1 }
 0x63d   :  { %v1169_v14 = vadd.f32 %v1168_v30, %v2744_v63  ;;  %v1170_v32 = vpop.f32.mrb[21].mxu0  ;;  %v2136_v16 = vpop.f32.mrb[45].mxu1  ;;  %v1210_v59 = vadd.f32 %v1209_v12, %v2795_v44 }
 0x63e   :  { %v1171_v18 = vadd.f32 %v1170_v32, %v2747_v3  ;;  %v1172_v20 = vpop.f32.mrb[22].mxu0  ;;  %v1212_v38 = vpop.f32.mrb[46].mxu1 }
 0x63f   :  { %v1215_v29 = vadd.f32 %v1169_v14, %v2767_v61  ;;  %v1173_v13 = vpop.f32.mrb[23].mxu0  ;;  %v2137_v40 = vpop.f32.mrb[47].mxu1  ;;  %v1466_v20 = vpack.c.bf16 %v2845_v0, %v2799_v15  ;;  %v2275_v38 = vld [vmem:[%s3263_s6 + $0x10] sm:$0xff]   ;;  %v2277_v15 = vld [vmem:[%s3263_s6 + $0x20] sm:$0xff]   ;;  %v2278_v0 = vld [vmem:[%s3263_s6 + $0x28] sm:$0xff]  }
 0x640   :  { %v1222_v2 = vadd.f32 %v1171_v18, %v2769_v7  ;;  %v2274_v18 = vld [vmem:[%s3263_s6 + $0x8] sm:$0xff]   ;;  %v2279_v13 = vld [vmem:[%s3263_s6 + $0x30] sm:$0xff]   ;;  %v2280_v40 = vld [vmem:[%s3263_s6 + $0x38] sm:$0xff]  }
 0x641   :  { %v1875_v58 = vmul.f32 -1.442695, %v1215_v29  ;;  %v2276_v29 = vld [vmem:[%s3263_s6 + $0x18] sm:$0xff]  }
 0x642   :  { %v1876_v22 = vmul.f32 -1.442695, %v1222_v2  ;;  %v1467_v2 = vpack.c.bf16 %v2937_v34, %v2891_v48  ;;  %v3284_v48 = vld [vmem:[#allocation7_spill] sm:$0xff] }
 0x643   :  { %2331 = vpow2.f32 %v1875_v58 }
 0x644   :  { %2333 = vpow2.f32 %v1876_v22 }
 0x64d   :  { %v2332_v27 = vpop.eup %2331 }
 0x64e   :  { %v1219_v31 = vadd.f32 1.0, %v2332_v27  ;;  %v2334_v9 = vpop.eup %2333 }
 0x64f   :  { %v1226_v35 = vadd.f32 1.0, %v2334_v9 }
 0x650   :  { %2335 = vrcp.f32 %v1219_v31 }
 0x651   :  { %2337 = vrcp.f32 %v1226_v35 }
 0x65a   :  { %v2336_v45 = vpop.eup %2335 }
 0x65b   :  { %v1229_v62 = vmul.f32 %v2336_v45, %v1210_v59  ;;  %v2338_v41 = vpop.eup %2337 }
 0x65c   :  { %v1232_v56 = vsub.f32 1.0, %v2338_v41  ;;  %v1234_v5 = vmul.f32 %v2338_v41, %v3033_v43 }
 0x65d   :  { %v1230_v61 = vadd.f32 %v1229_v62, %v2792_v36 }
 0x65f   :  { %2339 = vtanh.f32 %v1230_v61  ;;  %v3283_v61 = vld [vmem:[#allocation6_spill] sm:$0xff] }
 0x669   :  { %v2340_v7 = vpop.eup %2339 }
 0x66a   :  { %v1233_v23 = vmul.f32 %v2340_v7, %v1232_v56 }
 0x66c   :  { %v3109_v1 = vadd.f32 %v1234_v5, %v1233_v23 }
 0x66e   :  { %v1242_v30 = vpack.c.bf16 %v3109_v1, %v3109_v1  ;;  %v1468_v58 = vpack.c.bf16 %v3109_v1, %v3033_v43 }
 0x670   :  { %1276 = vmatmul.mubr.bf16.vlgmr.msra.gmra.mrb[24].mxu0 %v1242_v30  ;;  %2155 = vmatmul.mubr.bf16.vlgmr.msra.gmra.mrb[48].mxu1 %v1242_v30  ;;  %v3285_v30 = vld [vmem:[#allocation5_spill] sm:$0xff] }
 0x671   :  { %1353 = vmatpush1.bf16.msra.mxu0 %v2944_v39  ;;  %2159 = vmatpush3.bf16.msra.mxu1 %v2654_v47  ;;  %v2273_v47 = vld [vmem:[%s3263_s6] sm:$0xff]  }
 0x672   :  { %1354 = vmatprep.subr.bf16.mxu0 %v2951_v46  ;;  %2160 = vmatprep.subr.bf16.mxu1 %v3280_v57 }
 0x673   :  { %1384 = vmatprep.mubr.bf16.mxu0 %v3281_v21  ;;  %2174 = vmatprep.mubr.msk.bf16.mxu1 %vm2379_vm0, %v3280_v57 }
 0x675   :  { %1355 = vmatpush1.bf16.msra.mxu0 %v2961_v42  ;;  %2161 = vmatpush3.bf16.msra.mxu1 %v2663_v49 }
 0x676   :  { %1356 = vmatprep.subr.bf16.mxu0 %v2968_v60  ;;  %2162 = vmatprep.subr.bf16.mxu1 %v3280_v57 }
 0x679   :  { %1357 = vmatpush1.bf16.msra.mxu0 %v2975_v33  ;;  %2163 = vmatpush3.bf16.msra.mxu1 %v2670_v50 }
 0x67a   :  { %1358 = vmatprep.subr.bf16.mxu0 %v2982_v4  ;;  %2164 = vmatprep.subr.bf16.mxu1 %v3280_v57 }
 0x67d   :  { %1359 = vmatpush1.bf16.msra.mxu0 %v2989_v6  ;;  %2165 = vmatpush3.bf16.msra.mxu1 %v2677_v51 }
 0x67e   :  { %1360 = vmatprep.subr.bf16.mxu0 %v2996_v8  ;;  %2166 = vmatprep.subr.bf16.mxu1 %v3280_v57 }
 0x681   :  { %1361 = vmatpush1.bf16.msra.mxu0 %v3003_v10  ;;  %2167 = vmatpush3.bf16.msra.mxu1 %v2686_v52 }
 0x682   :  { %1362 = vmatprep.subr.bf16.mxu0 %v3061_v19  ;;  %2168 = vmatprep.subr.bf16.mxu1 %v3280_v57 }
 0x685   :  { %1363 = vmatpush1.bf16.msra.mxu0 %v3068_v37  ;;  %2169 = vmatpush3.bf16.msra.mxu1 %v2693_v53 }
 0x686   :  { %1364 = vmatprep.subr.bf16.mxu0 %v3075_v25  ;;  %2170 = vmatprep.subr.bf16.mxu1 %v3280_v57 }
 0x689   :  { %1365 = vmatpush1.bf16.msra.mxu0 %v3082_v24  ;;  %2171 = vmatpush3.bf16.msra.mxu1 %v2700_v54  ;;  %v3282_v24 = vld [vmem:[#allocation8_spill] sm:$0xff] }
 0x68a   :  { %1366 = vmatprep.subr.bf16.mxu0 %v3089_v26  ;;  %2172 = vmatprep.subr.bf16.mxu1 %v3280_v57 }
 0x68d   :  { %1367 = vmatpush1.bf16.msra.mxu0 %v3096_v28  ;;  %2173 = vmatpush3.bf16.msra.mxu1 %v2707_v55 }
 0x68e   :  { %2178 = vmatprep.subr.bf16.mxu0 %v2273_v47 }
 0x743   :  { %v1277_v49 = vpop.f32.mrb[24].mxu0  ;;  %v1318_v50 = vpop.f32.mrb[48].mxu1 }
 0x744   :  { %v1278_v51 = vadd.f32 %v1277_v49, %v2744_v63  ;;  %v1279_v52 = vpop.f32.mrb[25].mxu0  ;;  %v2156_v53 = vpop.f32.mrb[49].mxu1  ;;  %v1319_v19 = vadd.f32 %v1318_v50, %v2795_v44  ;;  %v1628_v49 = vand.u32 7, %v3285_v30  ;;  %v1618_v50 = vadd.s32 24, %v3285_v30 }
 0x745   :  { %v1280_v54 = vadd.f32 %v1279_v52, %v2747_v3  ;;  %v1281_v36 = vpop.f32.mrb[26].mxu0  ;;  %v1321_v21 = vpop.f32.mrb[50].mxu1 }
 0x746   :  { %v1324_v39 = vadd.f32 %v1278_v51, %v2771_v11  ;;  %v1282_v46 = vpop.f32.mrb[27].mxu0  ;;  %v2157_v42 = vpop.f32.mrb[51].mxu1  ;;  %v3199_v21 = vld [vmem:[%s3264_s7] ss:$0 sm:$0xff]  ;;  %vm1729_vm1 = vcmp.lt.s32.totalorder %v1628_v49, 2 }
 0x747   :  { %v1331_v55 = vadd.f32 %v1280_v54, %v2774_v17 }
 0x748   :  { %v1877_v60 = vmul.f32 -1.442695, %v1324_v39  ;;  %v1649_v39 = vand.u32 7, %v1618_v50 }
 0x749   :  { %v1878_v33 = vmul.f32 -1.442695, %v1331_v55  ;;  %v3286_v55 = vld [vmem:[#allocation9_spill] sm:$0xff] }
 0x74a   :  { %2341 = vpow2.f32 %v1877_v60  ;;  %vm1732_vm4 = vcmp.lt.s32.totalorder %v1649_v39, 2 }
 0x74b   :  { %2343 = vpow2.f32 %v1878_v33 }
 0x754   :  { %v2342_v4 = vpop.eup %2341 }
 0x755   :  { %v1328_v6 = vadd.f32 1.0, %v2342_v4  ;;  %v2344_v8 = vpop.eup %2343 }
 0x756   :  { %v1335_v10 = vadd.f32 1.0, %v2344_v8 }
 0x757   :  { %2345 = vrcp.f32 %v1328_v6 }
 0x758   :  { %2347 = vrcp.f32 %v1335_v10 }
 0x761   :  { %v2346_v37 = vpop.eup %2345 }
 0x762   :  { %v1338_v25 = vmul.f32 %v2346_v37, %v1319_v19  ;;  %v2348_v26 = vpop.eup %2347 }
 0x763   :  { %v1341_v28 = vsub.f32 1.0, %v2348_v26  ;;  %v1343_v14 = vmul.f32 %v2348_v26, %v3109_v1  ;;  %v1893_v26 = vsel %vm1732_vm4, 1.0, %v3280_v57 }
 0x764   :  { %v1339_v11 = vadd.f32 %v1338_v25, %v3282_v24 }
 0x766   :  { %2349 = vtanh.f32 %v1339_v11 }
 0x770   :  { %v2350_v17 = vpop.eup %2349 }
 0x771   :  { %v1342_v12 = vmul.f32 %v2350_v17, %v1341_v28 }
 0x773   :  { %v3156_v32 = vadd.f32 %v1343_v14, %v1342_v12 }
 0x775   :  { %v1351_v16 = vpack.c.bf16 %v3156_v32, %v3156_v32 }
 0x777   :  { %1385 = vmatmul.mubr.bf16.vlgmr.msra.gmra.mrb[28].mxu0 %v1351_v16  ;;  %2175 = vmatmul.mubr.bf16.vlgmr.msra.gmra.mrb[52].mxu1 %v1351_v16 }
 0x778   :  { %2179 = vmatpush3.bf16.msra.mxu0 %v2273_v47  ;;  %2194 = vmatprep.mubr.bf16.mxu0 %v1466_v20  ;;  %v1617_v47 = vadd.s32 16, %v3285_v30 }
 0x779   :  { %2180 = vmatprep.subr.bf16.mxu0 %v2274_v18 }
 0x77a   :  { %v1642_v52 = vand.u32 7, %v1617_v47 }
 0x77c   :  { %2181 = vmatpush3.bf16.msra.mxu0 %v2274_v18  ;;  %vm1731_vm2 = vcmp.lt.s32.totalorder %v1642_v52, 2 }
 0x77d   :  { %2182 = vmatprep.subr.bf16.mxu0 %v2275_v38  ;;  %v1892_v10 = vsel %vm1731_vm2, 1.0, %v3280_v57 }
 0x780   :  { %2183 = vmatpush3.bf16.msra.mxu0 %v2275_v38 }
 0x781   :  { %2184 = vmatprep.subr.bf16.mxu0 %v2276_v29 }
 0x784   :  { %2185 = vmatpush3.bf16.msra.mxu0 %v2276_v29 }
 0x785   :  { %2186 = vmatprep.subr.bf16.mxu0 %v2277_v15 }
 0x788   :  { %2187 = vmatpush3.bf16.msra.mxu0 %v2277_v15 }
 0x789   :  { %2188 = vmatprep.subr.bf16.mxu0 %v2278_v0 }
 0x78c   :  { %2189 = vmatpush3.bf16.msra.mxu0 %v2278_v0 }
 0x78d   :  { %2190 = vmatprep.subr.bf16.mxu0 %v2279_v13 }
 0x790   :  { %2191 = vmatpush3.bf16.msra.mxu0 %v2279_v13 }
 0x791   :  { %2192 = vmatprep.subr.bf16.mxu0 %v2280_v40 }
 0x794   :  { %2193 = vmatpush3.bf16.msra.mxu0 %v2280_v40 }
 0x797   :  { %2195 = vmatmul.mubr.bf16.vlgmr.msra.gmra.mrb[32].mxu0 %v1467_v2 }
 0x798   :  { %2198 = vmatprep.mubr.bf16.mxu0 %v1468_v58 }
 0x84a   :  { %v1386_v22 = vpop.f32.mrb[28].mxu0  ;;  %v1427_v27 = vpop.f32.mrb[52].mxu1 }
 0x84b   :  { %v1387_v31 = vadd.f32 %v1386_v22, %v2744_v63  ;;  %v1388_v9 = vpop.f32.mrb[29].mxu0  ;;  %v2176_v35 = vpop.f32.mrb[53].mxu1  ;;  %v1428_v54 = vadd.f32 %v1427_v27, %v2795_v44  ;;  %v1890_v44 = vsel %vm1729_vm1, 1.0, %v3280_v57 }
 0x84c   :  { %v1389_v59 = vadd.f32 %v1388_v9, %v2747_v3  ;;  %v1390_v45 = vpop.f32.mrb[30].mxu0  ;;  %v1430_v62 = vpop.f32.mrb[54].mxu1  ;;  %v1616_v3 = vadd.s32 8, %v3285_v30 }
 0x84d   :  { %v1433_v41 = vadd.f32 %v1387_v31, %v3283_v61  ;;  %v1391_v56 = vpop.f32.mrb[31].mxu0  ;;  %v2177_v7 = vpop.f32.mrb[55].mxu1  ;;  %v1621_v45 = vadd.s32 48, %v3285_v30  ;;  %v1620_v62 = vadd.s32 40, %v3285_v30 }
 0x84e   :  { %v1440_v34 = vadd.f32 %v1389_v59, %v3284_v48  ;;  %v1635_v53 = vand.u32 7, %v1616_v3  ;;  %v1619_v59 = vadd.s32 32, %v3285_v30 }
 0x84f   :  { %v1879_v23 = vmul.f32 -1.442695, %v1433_v41  ;;  %v1622_v41 = vadd.s32 56, %v3285_v30  ;;  %v1670_v56 = vand.u32 7, %v1621_v45  ;;  %v1663_v7 = vand.u32 7, %v1620_v62 }
 0x850   :  { %v1880_v43 = vmul.f32 -1.442695, %v1440_v34  ;;  %vm1730_vm3 = vcmp.lt.s32.totalorder %v1635_v53, 2  ;;  %v1656_v61 = vand.u32 7, %v1619_v59 }
 0x851   :  { %2351 = vpow2.f32 %v1879_v23  ;;  %v1891_v25 = vsel %vm1730_vm3, 1.0, %v3280_v57  ;;  %v1677_v48 = vand.u32 7, %v1622_v41  ;;  %vm1735_vm6 = vcmp.lt.s32.totalorder %v1670_v56, 2 }
 0x852   :  { %2353 = vpow2.f32 %v1880_v43  ;;  %vm1733_vm5 = vcmp.lt.s32.totalorder %v1656_v61, 2  ;;  %vm1734_vm7 = vcmp.lt.s32.totalorder %v1663_v7, 2 }
 0x853   :  { %v1894_v43 = vsel %vm1733_vm5, 1.0, %v3280_v57  ;;  %vm1736_vm8 = vcmp.lt.s32.totalorder %v1677_v48, 2  ;;  %v1895_v3 = vsel %vm1734_vm7, 1.0, %v3280_v57 }
 0x85b   :  { %v2352_v5 = vpop.eup %2351 }
 0x85c   :  { %v1437_v1 = vadd.f32 1.0, %v2352_v5  ;;  %v2354_v63 = vpop.eup %2353 }
 0x85d   :  { %v1444_v51 = vadd.f32 1.0, %v2354_v63  ;;  %v1896_v63 = vsel %vm1735_vm6, 1.0, %v3280_v57 }
 0x85e   :  { %2355 = vrcp.f32 %v1437_v1 }
 0x85f   :  { %2357 = vrcp.f32 %v1444_v51  ;;  %v1897_v51 = vsel %vm1736_vm8, 1.0, %v3280_v57 }
 0x868   :  { %v2356_v36 = vpop.eup %2355 }
 0x869   :  { %v1447_v46 = vmul.f32 %v2356_v36, %v1428_v54  ;;  %v2358_v20 = vpop.eup %2357 }
 0x86a   :  { %v2196_v42 = vpop.f32.mrb[32].mxu0  ;;  %v1450_v40 = vsub.f32 1.0, %v2358_v20  ;;  %v1452_v27 = vmul.f32 %v2358_v20, %v3156_v32 }
 0x86b   :  { %v1448_v60 = vadd.f32 %v1447_v46, %v3286_v55  ;;  %v1584_v33 = vadd.f32 %v2196_v42, %v3199_v21  ;;  %v1575_v4 = vpop.f32.mrb[33].mxu0 }
 0x86c   :  { %v1576_v6 = vadd.f32 %v3199_v21, %v1575_v4  ;;  %v2197_v8 = vpop.f32.mrb[34].mxu0 }
 0x86d   :  { %2359 = vtanh.f32 %v1448_v60  ;;  %1608 = vst [vmem:[%s3265_s8 + $0x10] sm:$0xff] %v1584_v33  ;;  %v1587_v19 = vadd.f32 %v2197_v8, %v3199_v21  ;;  %v1578_v37 = vpop.f32.mrb[35].mxu0  ;;  %v1755_v28 = vmul.f32 %v1892_v10, %v1584_v33 }
 0x86e   :  { %1606 = vst [vmem:[%s3265_s8] sm:$0xff] %v1576_v6  ;;  %v1753_v24 = vmul.f32 %v1890_v44, %v1576_v6  ;;  %v1579_v11 = vadd.f32 %v3199_v21, %v1578_v37 }
 0x86f   :  { %1609 = vst [vmem:[%s3265_s8 + $0x18] sm:$0xff] %v1587_v19  ;;  %v1756_v14 = vmul.f32 %v1893_v26, %v1587_v19  ;;  %v1776_v38 = vmul.f32 %v1755_v28, %v1584_v33 }
 0x870   :  { %1607 = vst [vmem:[%s3265_s8 + $0x8] sm:$0xff] %v1579_v11  ;;  %v1754_v17 = vmul.f32 %v1891_v25, %v1579_v11  ;;  %v1774_v12 = vmul.f32 %v1753_v24, %v1576_v6 }
 0x871   :  { %v1777_v0 = vmul.f32 %v1756_v14, %v1587_v19 }
 0x872   :  { %v1761_v16 = vadd.f32 %v1754_v17, %v1753_v24  ;;  %v1775_v18 = vmul.f32 %v1754_v17, %v1579_v11 }
 0x874   :  { %v1762_v29 = vadd.f32 %v1761_v16, %v1755_v28  ;;  %v1782_v15 = vadd.f32 %v1775_v18, %v1774_v12 }
 0x876   :  { %v1783_v13 = vadd.f32 %v1782_v15, %v1776_v38  ;;  %v1763_v2 = vadd.f32 %v1762_v29, %v1756_v14 }
 0x877   :  { %v2360_v58 = vpop.eup %2359 }
 0x878   :  { %v1451_v22 = vmul.f32 %v2360_v58, %v1450_v40  ;;  %v1784_v31 = vadd.f32 %v1783_v13, %v1777_v0 }
 0x87a   :  { %v1453_v9 = vadd.f32 %v1452_v27, %v1451_v22 }
 0x87c   :  { %1457 = vst [vmem:[%s3266_s9] sm:$0xff] %v1453_v9  ;;  %v1469_v35 = vpack.c.bf16 %v1453_v9, %v3156_v32 }
 0x87e   :  { %2199 = vmatmul.mubr.bf16.gmra.mrb[36].mxu0 %v1469_v35 }
 0x951   :  { %v2200_v34 = vpop.f32.mrb[36].mxu0 }
 0x952   :  { %v1600_v23 = vadd.f32 %v2200_v34, %v3199_v21  ;;  %v1591_v32 = vpop.f32.mrb[37].mxu0 }
 0x953   :  { %v1592_v5 = vadd.f32 %v3199_v21, %v1591_v32  ;;  %v2201_v1 = vpop.f32.mrb[38].mxu0 }
 0x954   :  { %1612 = vst [vmem:[%s3265_s8 + $0x30] sm:$0xff] %v1600_v23  ;;  %v1603_v30 = vadd.f32 %v2201_v1, %v3199_v21  ;;  %v1594_v47 = vpop.f32.mrb[39].mxu0  ;;  %v1759_v52 = vmul.f32 %v1896_v63, %v1600_v23 }
 0x955   :  { %1610 = vst [vmem:[%s3265_s8 + $0x20] sm:$0xff] %v1592_v5  ;;  %v1757_v49 = vmul.f32 %v1894_v43, %v1592_v5  ;;  %v1595_v50 = vadd.f32 %v3199_v21, %v1594_v47 }
 0x956   :  { %1613 = vst [vmem:[%s3265_s8 + $0x38] sm:$0xff] %v1603_v30  ;;  %v1760_v46 = vmul.f32 %v1897_v51, %v1603_v30  ;;  %v1780_v60 = vmul.f32 %v1759_v52, %v1600_v23 }
 0x957   :  { %v1764_v53 = vadd.f32 %v1763_v2, %v1757_v49  ;;  %v1778_v54 = vmul.f32 %v1757_v49, %v1592_v5  ;;  %1611 = vst [vmem:[%s3265_s8 + $0x28] sm:$0xff] %v1595_v50  ;;  %v1758_v36 = vmul.f32 %v1895_v3, %v1595_v50 }
 0x958   :  { %v1781_v4 = vmul.f32 %v1760_v46, %v1603_v30 }
 0x959   :  { %v1785_v39 = vadd.f32 %v1784_v31, %v1778_v54  ;;  %v1765_v42 = vadd.f32 %v1764_v53, %v1758_v36  ;;  %v1779_v55 = vmul.f32 %v1758_v36, %v1595_v50 }
 0x95b   :  { %v1766_v21 = vadd.f32 %v1765_v42, %v1759_v52  ;;  %v1786_v33 = vadd.f32 %v1785_v39, %v1779_v55 }
 0x95d   :  { %v1767_v44 = vadd.f32 %v1766_v21, %v1760_v46  ;;  %v1787_v6 = vadd.f32 %v1786_v33, %v1780_v60 }
 0x95f   :  { %v1768_v8 = vrot.slane %v1767_v44, 4  ;;  %v1788_v57 = vadd.f32 %v1787_v6, %v1781_v4 }
 0x961   :  { %v1769_v10 = vadd.f32 %v1768_v8, %v1767_v44  ;;  %v1789_v19 = vrot.slane %v1788_v57, 4 }
 0x963   :  { %v1770_v37 = vrot.slane %v1769_v10, 2  ;;  %v1790_v25 = vadd.f32 %v1789_v19, %v1788_v57 }
 0x965   :  { %v1771_v24 = vadd.f32 %v1770_v37, %v1769_v10  ;;  %v1791_v11 = vrot.slane %v1790_v25, 2 }
 0x967   :  { %v1772_v26 = vrot.slane %v1771_v24, 1  ;;  %v1792_v28 = vadd.f32 %v1791_v11, %v1790_v25 }
 0x969   :  { %v1773_v17 = vadd.f32 %v1772_v26, %v1771_v24  ;;  %v1793_v12 = vrot.slane %v1792_v28, 1 }
 0x96b   :  { %v1794_v14 = vadd.f32 %v1793_v12, %v1792_v28  ;;  %1795 = vst [vmem:[%s3267_s10] sm:$0xff] %v1773_v17 }
 0x96d   :  { %1796 = vst [vmem:[%s3268_s11] sm:$0xff] %v1794_v14 }

</bundles_post_ra>
